<compile_context>
chip_gen: v7x
topology: tpu7x:2x2x1
jax: 0.10.0
libtpu: 0.0.40
codegen_flags: <defaults>
</compile_context>

<pallas_src>
import jax
import jax.numpy as jnp
from jax import lax
from jax.experimental import pallas as pl
from jax.experimental.pallas import tpu as pltpu


def _round_up(x, m):
    return ((x + m - 1) // m) * m


# ----------------------------- Pallas kernel -----------------------------

def rnn_classifier_kernel(scalars_ref, lens_ref, emb_hbm_ref,
                          wih_ref, bfold_ref,
                          whh_f_ref, bhhn_f_ref,
                          whh_b_ref, bhhn_b_ref,
                          wfc_ref, bfc_ref,
                          out_ref,
                          gi_ref, emb_buf, dma_sem):
    Bp = lens_ref.shape[0]                 # padded batch
    GP = bhhn_f_ref.shape[1]               # per-gate lane pitch (multiple of 128)
    G3 = 3 * GP
    chunk_rows = emb_buf.shape[1]          # chunk_steps * Bp
    CH = chunk_rows // Bp                  # timesteps per chunk (static)

    max_len = scalars_ref[0]               # true max sequence length
    n_chunks = scalars_ref[1]              # ceil(max_len / CH)
    lens = lens_ref[...]                   # (Bp, 1) int32, for masking
    mm_dtype = whh_f_ref.dtype             # f32 or bf16 (MXU operands only)

    # ---- Phase 1: hoisted input-to-hidden matmul, chunked over time and ----
    # ---- double-buffered from HBM; both directions fused into one RHS.  ----
    def issue_chunk(c, slot):
        row = pl.multiple_of(c * chunk_rows, chunk_rows)
        pltpu.make_async_copy(emb_hbm_ref.at[pl.ds(row, chunk_rows)],
                              emb_buf.at[slot], dma_sem.at[slot]).start()

    @pl.when(n_chunks > 0)
    def _():
        issue_chunk(0, 0)

        @pl.loop(0, n_chunks)
        def _(c):
            slot = c & 1
            pltpu.make_async_copy(emb_hbm_ref.at[pl.ds(0, chunk_rows)],
                                  emb_buf.at[slot], dma_sem.at[slot]).wait()

            @pl.when(c + 1 < n_chunks)
            def _():
                issue_chunk(c + 1, 1 - slot)

            # gi = x @ [W_ih_f | W_ih_b]^T + folded biases, f32 accumulation.
            gi_chunk = (jnp.dot(emb_buf[slot], wih_ref[...],
                                preferred_element_type=jnp.float32)
                        + bfold_ref[...])                 # (CH*Bp, 6*GP) f32
            for j in range(CH):                           # static unroll
                gi_ref[c * CH + j] = (
                    gi_chunk[j * Bp:(j + 1) * Bp, :].astype(gi_ref.dtype))

    # ---- Phase 2: serial bidirectional recurrence over t < max_len. ----
    def gru_step(gi, h, whh_ref, bhhn_ref):
        # Single fused hidden-hidden matmul per step (gate blocks lane-aligned).
        gh = jnp.dot(h.astype(mm_dtype), whh_ref[...],
                     preferred_element_type=jnp.float32)
        gi = gi.astype(jnp.float32)
        r = jax.nn.sigmoid(gi[:, 0 * GP:1 * GP] + gh[:, 0 * GP:1 * GP])
        z = jax.nn.sigmoid(gi[:, 1 * GP:2 * GP] + gh[:, 1 * GP:2 * GP])
        n = jnp.tanh(gi[:, 2 * GP:3 * GP]
                     + r * (gh[:, 2 * GP:3 * GP] + bhhn_ref[...]))
        return (1.0 - z) * n + z * h

    def body(t, carry):
        h_f, h_b = carry
        # forward direction: timestep t (packed semantics via masking)
        gi_t = gi_ref[t]                                   # (Bp, 6*GP)
        h_f_new = gru_step(gi_t[:, :G3], h_f, whh_f_ref, bhhn_f_ref)
        h_f = jnp.where(lens > t, h_f_new, h_f)
        # backward direction: timestep max_len-1-t (padding masked out)
        tb = max_len - 1 - t
        gi_tb = gi_ref[tb]
        h_b_new = gru_step(gi_tb[:, G3:], h_b, whh_b_ref, bhhn_b_ref)
        h_b = jnp.where(lens > tb, h_b_new, h_b)
        return (h_f, h_b)

    h0 = jnp.zeros((Bp, GP), jnp.float32)
    h_f, h_b = lax.fori_loop(0, max_len, body, (h0, h0))

    # ---- Phase 3: fused fc epilogue.  hidden_cat = [h_bwd | h_fwd]. ----
    hcat = jnp.concatenate([h_b, h_f], axis=1).astype(mm_dtype)   # (Bp, 2*GP)
    out_ref[...] = (jnp.dot(hcat, wfc_ref[...],
                            preferred_element_type=jnp.float32) + bfc_ref[...])


# ----------------------------- wrapper -----------------------------

def rnn_classifier_forward(tokens, seq_lengths, params,
                           matmul_dtype=jnp.bfloat16, chunk_steps=32):
    """tokens: (B, T) int32, seq_lengths: (B,) int32 (need not be sorted).
    Returns logits (B, output_size) float32.
    matmul_dtype: MXU operand dtype (bf16 default; f32 for exact checking).
    chunk_steps (even): timesteps per hoisted-matmul chunk streamed from HBM."""
    B, T = tokens.shape
    H = params["embedding"].shape[1]
    O = params["w_fc"].shape[0]

    itemsize = jnp.dtype(matmul_dtype).itemsize
    row_align = 8 if itemsize >= 4 else 16     # keep packed-dtype tiles aligned
    Bp = _round_up(B, row_align)               # padded batch (sublane multiple)
    Hp = _round_up(H, 128)                     # padded matmul-K (lane-dense DMA)
    GP = _round_up(H, 128)                     # per-gate lane pitch
    G3, G6 = 3 * GP, 6 * GP
    Op = _round_up(O, 128)                     # lane-dense output

    CH = min(int(chunk_steps), T)              # timesteps per chunk
    Tp = _round_up(T, CH)                      # pad time so chunk DMAs stay in-bounds

    tok_p = jnp.zeros((Bp, T), jnp.int32).at[:B].set(tokens.astype(jnp.int32))
    lens_p = jnp.zeros((Bp,), jnp.int32).at[:B].set(seq_lengths.astype(jnp.int32))
    max_len = jnp.minimum(jnp.max(lens_p), T).astype(jnp.int32)
    n_chunks = (max_len + CH - 1) // CH
    scalars = jnp.stack([max_len, n_chunks]).astype(jnp.int32)

    # Glue: embedding gather + input.t() (time-major), padded, left in HBM.
    # TODO(synk): gather inside the kernel (scalar-prefetch tokens + row DMA).
    emb = params["embedding"][tok_p.T]                          # (T, Bp, H)
    emb_p = jnp.zeros((Tp, Bp, Hp), jnp.float32).at[:T, :, :H].set(emb)
    emb_p = emb_p.reshape(Tp * Bp, Hp).astype(matmul_dtype)

    def fuse_wih(w_f, w_b):   # 2x(3H,H) -> (Hp, 6*GP): x @ W_g^T, lane-aligned gates
        out = jnp.zeros((Hp, G6), jnp.float32)
        for d, w in enumerate((w_f, w_b)):
            wt = jnp.transpose(w.reshape(3, H, H), (0, 2, 1))
            for g in range(3):
                col = d * G3 + g * GP
                out = out.at[:H, col:col + H].set(wt[g])
        return out

    def fold_bias(pairs):     # -> (1, 6*GP): r,z get b_ih+b_hh; n gets b_ih only
        out = jnp.zeros((1, G6), jnp.float32)
        for d, (b_ih, b_hh) in enumerate(pairs):
            bi = b_ih.reshape(3, H)
            bh = b_hh.reshape(3, H)
            out = out.at[0, d * G3 + 0 * GP:d * G3 + 0 * GP + H].set(bi[0] + bh[0])
            out = out.at[0, d * G3 + 1 * GP:d * G3 + 1 * GP + H].set(bi[1] + bh[1])
            out = out.at[0, d * G3 + 2 * GP:d * G3 + 2 * GP + H].set(bi[2])
        return out

    def fuse_whh(w):          # (3H, H) -> (GP, 3*GP), rows padded to GP
        wt = jnp.transpose(w.reshape(3, H, H), (0, 2, 1))
        out = jnp.zeros((GP, G3), jnp.float32)
        for g in range(3):
            out = out.at[:H, g * GP:g * GP + H].set(wt[g])
        return out

    def bhh_n(b_hh):          # (3H,) -> (1, GP)
        return jnp.zeros((1, GP), jnp.float32).at[0, :H].set(b_hh.reshape(3, H)[2])

    # fc: hidden_cat = [h_bwd | h_fwd]; w_fc cols [:H] multiply h_bwd, [H:] h_fwd.
    wfc = params["w_fc"]
    wfc_fused = jnp.zeros((2 * GP, Op), jnp.float32)
    wfc_fused = wfc_fused.at[:H, :O].set(wfc[:, :H].T)
    wfc_fused = wfc_fused.at[GP:GP + H, :O].set(wfc[:, H:].T)
    bfc = jnp.zeros((1, Op), jnp.float32).at[0, :O].set(params["b_fc"])

    # ---- VMEM budget + cost estimate ----
    gi_bytes = Tp * Bp * G6 * itemsize
    embbuf_bytes = 2 * CH * Bp * Hp * itemsize
    w_bytes = (Hp * G6 + 2 * GP * G3 + 2 * GP * Op) * itemsize
    misc_bytes = (G6 + 2 * GP + Op + Bp + Bp * Op) * 4
    need = gi_bytes + embbuf_bytes + w_bytes + misc_bytes
    try:
        vmem_cap = int(pltpu.get_tpu_info().vmem_capacity_bytes)
    except Exception:
        vmem_cap = 64 * 1024 * 1024
    vmem_limit = int(min(max(2 * need + (4 << 20), 32 << 20),
                         int(0.85 * vmem_cap)))

    cost = pl.CostEstimate(
        flops=int(2 * Tp * Bp * Hp * G6            # hoisted input matmul
                  + 2 * T * 2 * Bp * GP * G3       # recurrence (both directions)
                  + 2 * Bp * 2 * GP * Op),         # fc
        transcendentals=int(T * 2 * 3 * Bp * GP),
        bytes_accessed=int(Tp * Bp * Hp * itemsize + 2 * gi_bytes + w_bytes
                           + Bp * Op * 4),
    )

    smem = pl.BlockSpec(memory_space=pltpu.MemorySpace.SMEM)
    vmem = pl.BlockSpec(memory_space=pltpu.MemorySpace.VMEM)
    hbm = pl.BlockSpec(memory_space=pl.ANY)

    args = (
        scalars,                          # SMEM: [max_len, n_chunks]
        lens_p.reshape(Bp, 1),            # VMEM: mask vector
        emb_p,                            # HBM: embedded sequence (streamed)
        fuse_wih(params["w_ih_f"], params["w_ih_b"]).astype(matmul_dtype),
        fold_bias(((params["b_ih_f"], params["b_hh_f"]),
                   (params["b_ih_b"], params["b_hh_b"]))),
        fuse_whh(params["w_hh_f"]).astype(matmul_dtype),
        bhh_n(params["b_hh_f"]),
        fuse_whh(params["w_hh_b"]).astype(matmul_dtype),
        bhh_n(params["b_hh_b"]),
        wfc_fused.astype(matmul_dtype),
        bfc,
    )

    out = pl.pallas_call(
        rnn_classifier_kernel,
        out_shape=jax.ShapeDtypeStruct((Bp, Op), jnp.float32),
        in_specs=[smem, vmem, hbm] + [vmem] * 8,
        out_specs=vmem,
        scratch_shapes=[
            pltpu.VMEM((Tp, Bp, G6), matmul_dtype),        # fused gi slab
            pltpu.VMEM((2, CH * Bp, Hp), matmul_dtype),    # emb double buffer
            pltpu.SemaphoreType.DMA((2,)),
        ],
        compiler_params=pltpu.CompilerParams(vmem_limit_bytes=vmem_limit),
        cost_estimate=cost,
    )(*args)
    return out[:B, :O]


# ----------------------------- pure-JAX reference -----------------------------

def rnn_classifier_reference(tokens, seq_lengths, params):
    B, T = tokens.shape
    H = params["embedding"].shape[1]
    emb = params["embedding"][tokens.T]                # (T, B, H)
    lens = seq_lengths.astype(jnp.int32).reshape(B, 1)

    def cell(x, h, w_ih, w_hh, b_ih, b_hh):
        gi = x @ w_ih.T + b_ih
        gh = h @ w_hh.T + b_hh
        i_r, i_z, i_n = jnp.split(gi, 3, axis=1)
        h_r, h_z, h_n = jnp.split(gh, 3, axis=1)
        r = jax.nn.sigmoid(i_r + h_r)
        z = jax.nn.sigmoid(i_z + h_z)
        n = jnp.tanh(i_n + r * h_n)
        return (1.0 - z) * n + z * h

    h_f = jnp.zeros((B, H), jnp.float32)
    h_b = jnp.zeros((B, H), jnp.float32)
    for t in range(T):
        hn = cell(emb[t], h_f, params["w_ih_f"], params["w_hh_f"],
                  params["b_ih_f"], params["b_hh_f"])
        h_f = jnp.where(lens > t, hn, h_f)
        tb = T - 1 - t
        hn = cell(emb[tb], h_b, params["w_ih_b"], params["w_hh_b"],
                  params["b_ih_b"], params["b_hh_b"])
        h_b = jnp.where(lens > tb, hn, h_b)
    hidden_cat = jnp.concatenate([h_b, h_f], axis=1)
    return hidden_cat @ params["w_fc"].T + params["b_fc"]


# ----------------------------- main -----------------------------

def make_params(key, vocab_size, hidden_size, output_size):
    k = 1.0 / jnp.sqrt(hidden_size)
    keys = jax.random.split(key, 12)
    u = lambda kk, shape: jax.random.uniform(kk, shape, jnp.float32, -k, k)
    return {
        "embedding": jax.random.normal(keys[0], (vocab_size, hidden_size), jnp.float32),
        "w_ih_f": u(keys[1], (3 * hidden_size, hidden_size)),
        "w_hh_f": u(keys[2], (3 * hidden_size, hidden_size)),
        "b_ih_f": u(keys[3], (3 * hidden_size,)),
        "b_hh_f": u(keys[4], (3 * hidden_size,)),
        "w_ih_b": u(keys[5], (3 * hidden_size, hidden_size)),
        "w_hh_b": u(keys[6], (3 * hidden_size, hidden_size)),
        "b_ih_b": u(keys[7], (3 * hidden_size,)),
        "b_hh_b": u(keys[8], (3 * hidden_size,)),
        "w_fc": u(keys[9], (output_size, 2 * hidden_size)),
        "b_fc": u(keys[10], (output_size,)),
    }


if __name__ == "__main__":
    VOCAB, HIDDEN, OUTPUT = 50, 32, 5
    B, T = 4, 8

    key = jax.random.PRNGKey(0)
    kp, kt = jax.random.split(key)
    params = make_params(kp, VOCAB, HIDDEN, OUTPUT)

    tokens = jax.random.randint(kt, (B, T), 0, VOCAB, dtype=jnp.int32)
    # max_len (=6) < T (=8) exercises the dynamic trip-count / chunk bound.
    seq_lengths = jnp.array([6, 5, 5, 3], dtype=jnp.int32)

    ref = rnn_classifier_reference(tokens, seq_lengths, params)

    # f32 MXU-operand path: bit-faithful check against the pure-JAX reference.
    out_f32 = jax.block_until_ready(
        rnn_classifier_forward(tokens, seq_lengths, params,
                               matmul_dtype=jnp.float32))
    assert out_f32.shape == (B, OUTPUT)
    assert jnp.allclose(out_f32, ref, rtol=1e-4, atol=1e-4), \
        "mismatch vs JAX reference (f32)"

    # Multi-chunk streaming path (chunk_steps < max_len exercises the
    # double-buffered HBM->VMEM pipeline across several chunks).
    out_chunked = jax.block_until_ready(
        rnn_classifier_forward(tokens, seq_lengths, params,
                               matmul_dtype=jnp.float32, chunk_steps=2))
    assert jnp.allclose(out_chunked, ref, rtol=1e-4, atol=1e-4), \
        "mismatch vs JAX reference (f32, chunked)"

    # Default bf16 MXU-operand path (all generations incl. v5e): f32 accumulate,
    # f32 elementwise, gi slab stored in bf16.
    out_bf16 = jax.block_until_ready(
        rnn_classifier_forward(tokens, seq_lengths, params))
    assert jnp.allclose(out_bf16, ref, rtol=5e-2, atol=5e-2), \
        "mismatch vs JAX reference (bf16)"

    print("KERNEL_OK")
</pallas_src>

<mosaic_0001>
module attributes {stable_mosaic.version = 11 : i64} {
  func.func @rnn_classifier_kernel(%arg0: memref<2xi32, #tpu.memory_space<smem>>, %arg1: memref<8x1xi32, #tpu.memory_space<vmem>>, %arg2: memref<64x128xf32, #tpu.memory_space<any>>, %arg3: memref<128x768xf32, #tpu.memory_space<vmem>>, %arg4: memref<1x768xf32, #tpu.memory_space<vmem>>, %arg5: memref<128x384xf32, #tpu.memory_space<vmem>>, %arg6: memref<1x128xf32, #tpu.memory_space<vmem>>, %arg7: memref<128x384xf32, #tpu.memory_space<vmem>>, %arg8: memref<1x128xf32, #tpu.memory_space<vmem>>, %arg9: memref<256x128xf32, #tpu.memory_space<vmem>>, %arg10: memref<1x128xf32, #tpu.memory_space<vmem>>, %arg11: memref<8x128xf32, #tpu.memory_space<vmem>>, %arg12: memref<8x8x768xf32, #tpu.memory_space<vmem>>, %arg13: memref<2x64x128xf32, #tpu.memory_space<vmem>>, %arg14: memref<2x!tpu.dma_semaphore, #tpu.memory_space<semaphore_mem>>) attributes {dimension_semantics = [], scalar_prefetch = 0 : i64, scratch_operands = 3 : i64, tpu.core_type = #tpu.core_type<tc>} {
    %c0 = arith.constant 0 : index
    %0 = memref.load %arg0[%c0] : memref<2xi32, #tpu.memory_space<smem>>
    %c1 = arith.constant 1 : index
    %1 = memref.load %arg0[%c1] : memref<2xi32, #tpu.memory_space<smem>>
    %c0_0 = arith.constant 0 : index
    %c0_1 = arith.constant 0 : index
    %2 = vector.load %arg1[%c0_0, %c0_1] : memref<8x1xi32, #tpu.memory_space<vmem>>, vector<8x1xi32>
    %c0_i32 = arith.constant 0 : i32
    %3 = arith.cmpi sgt, %1, %c0_i32 : i32
    %4 = arith.extui %3 : i1 to i32
    %c0_i32_2 = arith.constant 0 : i32
    %5 = arith.cmpi ne, %4, %c0_i32_2 : i32
    scf.if %5 {
      %c0_i32_11 = arith.constant 0 : i32
      %17 = tpu.assume_multiple %c0_i32_11, 64 : i32
      %c0_i32_12 = arith.constant 0 : i32
      %c0_i32_13 = arith.constant 0 : i32
      %c0_i32_14 = arith.constant 0 : i32
      %18 = tpu.memref_slice %arg2[%17, %c0_i32_14] : memref<64x128xf32, #tpu.memory_space<any>> -> memref<64x128xf32, #tpu.memory_space<any>>
      %c0_i32_15 = arith.constant 0 : i32
      %c0_i32_16 = arith.constant 0 : i32
      %19 = tpu.memref_slice %arg13[%c0_i32_12, %c0_i32_15, %c0_i32_16] : memref<2x64x128xf32, #tpu.memory_space<vmem>> -> memref<1x64x128xf32, #tpu.memory_space<vmem>>
      %20 = tpu.memref_squeeze %19 : memref<1x64x128xf32, #tpu.memory_space<vmem>> -> memref<64x128xf32, #tpu.memory_space<vmem>>
      %21 = tpu.memref_slice %arg14[%c0_i32_13] : memref<2x!tpu.dma_semaphore, #tpu.memory_space<semaphore_mem>> -> memref<1x!tpu.dma_semaphore, #tpu.memory_space<semaphore_mem>>
      %22 = tpu.memref_squeeze %21 : memref<1x!tpu.dma_semaphore, #tpu.memory_space<semaphore_mem>> -> memref<!tpu.dma_semaphore, #tpu.memory_space<semaphore_mem>>
      tpu.enqueue_dma source(%18 : memref<64x128xf32, #tpu.memory_space<any>>) target(%20 : memref<64x128xf32, #tpu.memory_space<vmem>>) target_semaphore(%22 : memref<!tpu.dma_semaphore, #tpu.memory_space<semaphore_mem>>)
      %c0_i32_17 = arith.constant 0 : i32
      %23 = arith.subi %1, %c0_i32_17 : i32
      %c1_i32_18 = arith.constant 1 : i32
      %c1_i32_19 = arith.constant 1 : i32
      %24 = arith.subi %c1_i32_18, %c1_i32_19 : i32
      %25 = arith.addi %23, %24 : i32
      %c1_i32_20 = arith.constant 1 : i32
      %26 = arith.divsi %25, %c1_i32_20 : i32
      %c1_i32_21 = arith.constant 1 : i32
      %c0_i32_22 = arith.constant 0 : i32
      %c0_i32_23 = arith.constant 0 : i32
      %27 = arith.subi %26, %c0_i32_23 : i32
      %28 = arith.addi %c0_i32_23, %27 : i32
      %c1_i32_24 = arith.constant 1 : i32
      scf.for %arg15 = %c0_i32_23 to %28 step %c1_i32_24  : i32 {
        %29 = arith.muli %arg15, %c1_i32_21 : i32
        %30 = arith.addi %c0_i32_22, %29 : i32
        %c1_i32_25 = arith.constant 1 : i32
        %31 = arith.andi %30, %c1_i32_25 : i32
        %c0_i32_26 = arith.constant 0 : i32
        %c0_i32_27 = arith.constant 0 : i32
        %32 = tpu.memref_slice %arg2[%c0_i32_26, %c0_i32_27] : memref<64x128xf32, #tpu.memory_space<any>> -> memref<64x128xf32, #tpu.memory_space<any>>
        %c0_i32_28 = arith.constant 0 : i32
        %c0_i32_29 = arith.constant 0 : i32
        %33 = tpu.memref_slice %arg13[%31, %c0_i32_28, %c0_i32_29] : memref<2x64x128xf32, #tpu.memory_space<vmem>> -> memref<1x64x128xf32, #tpu.memory_space<vmem>>
        %34 = tpu.memref_squeeze %33 : memref<1x64x128xf32, #tpu.memory_space<vmem>> -> memref<64x128xf32, #tpu.memory_space<vmem>>
        %35 = tpu.memref_slice %arg14[%31] : memref<2x!tpu.dma_semaphore, #tpu.memory_space<semaphore_mem>> -> memref<1x!tpu.dma_semaphore, #tpu.memory_space<semaphore_mem>>
        %36 = tpu.memref_squeeze %35 : memref<1x!tpu.dma_semaphore, #tpu.memory_space<semaphore_mem>> -> memref<!tpu.dma_semaphore, #tpu.memory_space<semaphore_mem>>
        tpu.wait_dma2 semaphore(%36 : memref<!tpu.dma_semaphore, #tpu.memory_space<semaphore_mem>>) src(%32 : memref<64x128xf32, #tpu.memory_space<any>>) dst(%34 : memref<64x128xf32, #tpu.memory_space<vmem>>)
        %c1_i32_30 = arith.constant 1 : i32
        %37 = arith.addi %30, %c1_i32_30 : i32
        %38 = arith.cmpi slt, %37, %1 : i32
        %39 = arith.extui %38 : i1 to i32
        %c0_i32_31 = arith.constant 0 : i32
        %40 = arith.cmpi ne, %39, %c0_i32_31 : i32
        scf.if %40 {
          %c1_i32_64 = arith.constant 1 : i32
          %105 = arith.addi %30, %c1_i32_64 : i32
          %c1_i32_65 = arith.constant 1 : i32
          %106 = arith.subi %c1_i32_65, %31 : i32
          %c64_i32 = arith.constant 64 : i32
          %107 = arith.muli %105, %c64_i32 : i32
          %108 = tpu.assume_multiple %107, 64 : i32
          %c0_i32_66 = arith.constant 0 : i32
          %109 = tpu.memref_slice %arg2[%108, %c0_i32_66] : memref<64x128xf32, #tpu.memory_space<any>> -> memref<64x128xf32, #tpu.memory_space<any>>
          %c0_i32_67 = arith.constant 0 : i32
          %c0_i32_68 = arith.constant 0 : i32
          %110 = tpu.memref_slice %arg13[%106, %c0_i32_67, %c0_i32_68] : memref<2x64x128xf32, #tpu.memory_space<vmem>> -> memref<1x64x128xf32, #tpu.memory_space<vmem>>
          %111 = tpu.memref_squeeze %110 : memref<1x64x128xf32, #tpu.memory_space<vmem>> -> memref<64x128xf32, #tpu.memory_space<vmem>>
          %112 = tpu.memref_slice %arg14[%106] : memref<2x!tpu.dma_semaphore, #tpu.memory_space<semaphore_mem>> -> memref<1x!tpu.dma_semaphore, #tpu.memory_space<semaphore_mem>>
          %113 = tpu.memref_squeeze %112 : memref<1x!tpu.dma_semaphore, #tpu.memory_space<semaphore_mem>> -> memref<!tpu.dma_semaphore, #tpu.memory_space<semaphore_mem>>
          tpu.enqueue_dma source(%109 : memref<64x128xf32, #tpu.memory_space<any>>) target(%111 : memref<64x128xf32, #tpu.memory_space<vmem>>) target_semaphore(%113 : memref<!tpu.dma_semaphore, #tpu.memory_space<semaphore_mem>>)
        } else {
        }
        %41 = arith.index_cast %31 : i32 to index
        %c0_32 = arith.constant 0 : index
        %c0_33 = arith.constant 0 : index
        %42 = vector.load %arg13[%41, %c0_32, %c0_33] : memref<2x64x128xf32, #tpu.memory_space<vmem>>, vector<1x64x128xf32>
        %43 = vector.shape_cast %42 : vector<1x64x128xf32> to vector<64x128xf32>
        %c0_34 = arith.constant 0 : index
        %c0_35 = arith.constant 0 : index
        %44 = vector.load %arg3[%c0_34, %c0_35] : memref<128x768xf32, #tpu.memory_space<vmem>>, vector<128x768xf32>
        %cst_36 = arith.constant dense<0.000000e+00> : vector<64x768xf32>
        %45 = tpu.matmul %43, %44, %cst_36 {dimension_numbers = #tpu.dot_dimension_numbers<[1], [0], [0], [1], [0, 0, 1, 1], [], []>} : vector<64x128xf32>, vector<128x768xf32>, vector<64x768xf32> -> vector<64x768xf32>
        %c0_37 = arith.constant 0 : index
        %c0_38 = arith.constant 0 : index
        %46 = vector.load %arg4[%c0_37, %c0_38] : memref<1x768xf32, #tpu.memory_space<vmem>>, vector<1x768xf32>
        %47 = vector.broadcast %46 : vector<1x768xf32> to vector<64x768xf32>
        %48 = arith.addf %45, %47 : vector<64x768xf32>
        %49 = vector.extract_strided_slice %48 {offsets = [0, 0], sizes = [8, 768], strides = [1, 1]} : vector<64x768xf32> to vector<8x768xf32>
        %c8_i32 = arith.constant 8 : i32
        %50 = arith.muli %30, %c8_i32 : i32
        %c0_i32_39 = arith.constant 0 : i32
        %51 = arith.addi %50, %c0_i32_39 : i32
        %52 = arith.index_cast %51 : i32 to index
        %c0_40 = arith.constant 0 : index
        %c0_41 = arith.constant 0 : index
        %53 = vector.load %arg12[%52, %c0_40, %c0_41] : memref<8x8x768xf32, #tpu.memory_space<vmem>>, vector<1x8x768xf32>
        %54 = vector.shape_cast %53 : vector<1x8x768xf32> to vector<8x768xf32>
        %55 = vector.shape_cast %49 : vector<8x768xf32> to vector<1x8x768xf32>
        tpu.vector_store %arg12[%52, %c0_40, %c0_41], %55 {strides = array<i32>} : memref<8x8x768xf32, #tpu.memory_space<vmem>>, vector<1x8x768xf32>,
        %56 = vector.extract_strided_slice %48 {offsets = [8, 0], sizes = [8, 768], strides = [1, 1]} : vector<64x768xf32> to vector<8x768xf32>
        %c8_i32_42 = arith.constant 8 : i32
        %57 = arith.muli %30, %c8_i32_42 : i32
        %c1_i32_43 = arith.constant 1 : i32
        %58 = arith.addi %57, %c1_i32_43 : i32
        %59 = arith.index_cast %58 : i32 to index
        %c0_44 = arith.constant 0 : index
        %c0_45 = arith.constant 0 : index
        %60 = vector.load %arg12[%59, %c0_44, %c0_45] : memref<8x8x768xf32, #tpu.memory_space<vmem>>, vector<1x8x768xf32>
        %61 = vector.shape_cast %60 : vector<1x8x768xf32> to vector<8x768xf32>
        %62 = vector.shape_cast %56 : vector<8x768xf32> to vector<1x8x768xf32>
        tpu.vector_store %arg12[%59, %c0_44, %c0_45], %62 {strides = array<i32>} : memref<8x8x768xf32, #tpu.memory_space<vmem>>, vector<1x8x768xf32>,
        %63 = vector.extract_strided_slice %48 {offsets = [16, 0], sizes = [8, 768], strides = [1, 1]} : vector<64x768xf32> to vector<8x768xf32>
        %c8_i32_46 = arith.constant 8 : i32
        %64 = arith.muli %30, %c8_i32_46 : i32
        %c2_i32 = arith.constant 2 : i32
        %65 = arith.addi %64, %c2_i32 : i32
        %66 = arith.index_cast %65 : i32 to index
        %c0_47 = arith.constant 0 : index
        %c0_48 = arith.constant 0 : index
        %67 = vector.load %arg12[%66, %c0_47, %c0_48] : memref<8x8x768xf32, #tpu.memory_space<vmem>>, vector<1x8x768xf32>
        %68 = vector.shape_cast %67 : vector<1x8x768xf32> to vector<8x768xf32>
        %69 = vector.shape_cast %63 : vector<8x768xf32> to vector<1x8x768xf32>
        tpu.vector_store %arg12[%66, %c0_47, %c0_48], %69 {strides = array<i32>} : memref<8x8x768xf32, #tpu.memory_space<vmem>>, vector<1x8x768xf32>,
        %70 = vector.extract_strided_slice %48 {offsets = [24, 0], sizes = [8, 768], strides = [1, 1]} : vector<64x768xf32> to vector<8x768xf32>
        %c8_i32_49 = arith.constant 8 : i32
        %71 = arith.muli %30, %c8_i32_49 : i32
        %c3_i32 = arith.constant 3 : i32
        %72 = arith.addi %71, %c3_i32 : i32
        %73 = arith.index_cast %72 : i32 to index
        %c0_50 = arith.constant 0 : index
        %c0_51 = arith.constant 0 : index
        %74 = vector.load %arg12[%73, %c0_50, %c0_51] : memref<8x8x768xf32, #tpu.memory_space<vmem>>, vector<1x8x768xf32>
        %75 = vector.shape_cast %74 : vector<1x8x768xf32> to vector<8x768xf32>
        %76 = vector.shape_cast %70 : vector<8x768xf32> to vector<1x8x768xf32>
        tpu.vector_store %arg12[%73, %c0_50, %c0_51], %76 {strides = array<i32>} : memref<8x8x768xf32, #tpu.memory_space<vmem>>, vector<1x8x768xf32>,
        %77 = vector.extract_strided_slice %48 {offsets = [32, 0], sizes = [8, 768], strides = [1, 1]} : vector<64x768xf32> to vector<8x768xf32>
        %c8_i32_52 = arith.constant 8 : i32
        %78 = arith.muli %30, %c8_i32_52 : i32
        %c4_i32 = arith.constant 4 : i32
        %79 = arith.addi %78, %c4_i32 : i32
        %80 = arith.index_cast %79 : i32 to index
        %c0_53 = arith.constant 0 : index
        %c0_54 = arith.constant 0 : index
        %81 = vector.load %arg12[%80, %c0_53, %c0_54] : memref<8x8x768xf32, #tpu.memory_space<vmem>>, vector<1x8x768xf32>
        %82 = vector.shape_cast %81 : vector<1x8x768xf32> to vector<8x768xf32>
        %83 = vector.shape_cast %77 : vector<8x768xf32> to vector<1x8x768xf32>
        tpu.vector_store %arg12[%80, %c0_53, %c0_54], %83 {strides = array<i32>} : memref<8x8x768xf32, #tpu.memory_space<vmem>>, vector<1x8x768xf32>,
        %84 = vector.extract_strided_slice %48 {offsets = [40, 0], sizes = [8, 768], strides = [1, 1]} : vector<64x768xf32> to vector<8x768xf32>
        %c8_i32_55 = arith.constant 8 : i32
        %85 = arith.muli %30, %c8_i32_55 : i32
        %c5_i32 = arith.constant 5 : i32
        %86 = arith.addi %85, %c5_i32 : i32
        %87 = arith.index_cast %86 : i32 to index
        %c0_56 = arith.constant 0 : index
        %c0_57 = arith.constant 0 : index
        %88 = vector.load %arg12[%87, %c0_56, %c0_57] : memref<8x8x768xf32, #tpu.memory_space<vmem>>, vector<1x8x768xf32>
        %89 = vector.shape_cast %88 : vector<1x8x768xf32> to vector<8x768xf32>
        %90 = vector.shape_cast %84 : vector<8x768xf32> to vector<1x8x768xf32>
        tpu.vector_store %arg12[%87, %c0_56, %c0_57], %90 {strides = array<i32>} : memref<8x8x768xf32, #tpu.memory_space<vmem>>, vector<1x8x768xf32>,
        %91 = vector.extract_strided_slice %48 {offsets = [48, 0], sizes = [8, 768], strides = [1, 1]} : vector<64x768xf32> to vector<8x768xf32>
        %c8_i32_58 = arith.constant 8 : i32
        %92 = arith.muli %30, %c8_i32_58 : i32
        %c6_i32 = arith.constant 6 : i32
        %93 = arith.addi %92, %c6_i32 : i32
        %94 = arith.index_cast %93 : i32 to index
        %c0_59 = arith.constant 0 : index
        %c0_60 = arith.constant 0 : index
        %95 = vector.load %arg12[%94, %c0_59, %c0_60] : memref<8x8x768xf32, #tpu.memory_space<vmem>>, vector<1x8x768xf32>
        %96 = vector.shape_cast %95 : vector<1x8x768xf32> to vector<8x768xf32>
        %97 = vector.shape_cast %91 : vector<8x768xf32> to vector<1x8x768xf32>
        tpu.vector_store %arg12[%94, %c0_59, %c0_60], %97 {strides = array<i32>} : memref<8x8x768xf32, #tpu.memory_space<vmem>>, vector<1x8x768xf32>,
        %98 = vector.extract_strided_slice %48 {offsets = [56, 0], sizes = [8, 768], strides = [1, 1]} : vector<64x768xf32> to vector<8x768xf32>
        %c8_i32_61 = arith.constant 8 : i32
        %99 = arith.muli %30, %c8_i32_61 : i32
        %c7_i32 = arith.constant 7 : i32
        %100 = arith.addi %99, %c7_i32 : i32
        %101 = arith.index_cast %100 : i32 to index
        %c0_62 = arith.constant 0 : index
        %c0_63 = arith.constant 0 : index
        %102 = vector.load %arg12[%101, %c0_62, %c0_63] : memref<8x8x768xf32, #tpu.memory_space<vmem>>, vector<1x8x768xf32>
        %103 = vector.shape_cast %102 : vector<1x8x768xf32> to vector<8x768xf32>
        %104 = vector.shape_cast %98 : vector<8x768xf32> to vector<1x8x768xf32>
        tpu.vector_store %arg12[%101, %c0_62, %c0_63], %104 {strides = array<i32>} : memref<8x8x768xf32, #tpu.memory_space<vmem>>, vector<1x8x768xf32>,
      }
    } else {
    }
    %cst = arith.constant 0.000000e+00 : f32
    %6 = vector.broadcast %cst : f32 to vector<8x128xf32>
    %c0_i32_3 = arith.constant 0 : i32
    %7 = arith.subi %0, %c0_i32_3 : i32
    %8 = arith.addi %c0_i32_3, %7 : i32
    %c1_i32 = arith.constant 1 : i32
    %9:2 = scf.for %arg15 = %c0_i32_3 to %8 step %c1_i32 iter_args(%arg16 = %6, %arg17 = %6) -> (vector<8x128xf32>, vector<8x128xf32>)  : i32 {
      %17 = arith.index_cast %arg15 : i32 to index
      %c0_11 = arith.constant 0 : index
      %c0_12 = arith.constant 0 : index
      %18 = vector.load %arg12[%17, %c0_11, %c0_12] : memref<8x8x768xf32, #tpu.memory_space<vmem>>, vector<1x8x768xf32>
      %19 = vector.shape_cast %18 : vector<1x8x768xf32> to vector<8x768xf32>
      %20 = vector.extract_strided_slice %19 {offsets = [0, 0], sizes = [8, 384], strides = [1, 1]} : vector<8x768xf32> to vector<8x384xf32>
      %c0_13 = arith.constant 0 : index
      %c0_14 = arith.constant 0 : index
      %21 = vector.load %arg5[%c0_13, %c0_14] : memref<128x384xf32, #tpu.memory_space<vmem>>, vector<128x384xf32>
      %cst_15 = arith.constant dense<0.000000e+00> : vector<8x384xf32>
      %22 = tpu.matmul %arg16, %21, %cst_15 {dimension_numbers = #tpu.dot_dimension_numbers<[1], [0], [0], [1], [0, 0, 1, 1], [], []>} : vector<8x128xf32>, vector<128x384xf32>, vector<8x384xf32> -> vector<8x384xf32>
      %23 = vector.extract_strided_slice %20 {offsets = [0, 0], sizes = [8, 128], strides = [1, 1]} : vector<8x384xf32> to vector<8x128xf32>
      %24 = vector.extract_strided_slice %22 {offsets = [0, 0], sizes = [8, 128], strides = [1, 1]} : vector<8x384xf32> to vector<8x128xf32>
      %25 = arith.addf %23, %24 : vector<8x128xf32>
      %26 = arith.negf %25 : vector<8x128xf32>
      %27 = math.exp %26 : vector<8x128xf32>
      %cst_16 = arith.constant 1.000000e+00 : f32
      %28 = vector.broadcast %cst_16 : f32 to vector<8x128xf32>
      %29 = arith.addf %28, %27 : vector<8x128xf32>
      %30 = arith.divf %28, %29 : vector<8x128xf32>
      %31 = vector.extract_strided_slice %20 {offsets = [0, 128], sizes = [8, 128], strides = [1, 1]} : vector<8x384xf32> to vector<8x128xf32>
      %32 = vector.extract_strided_slice %22 {offsets = [0, 128], sizes = [8, 128], strides = [1, 1]} : vector<8x384xf32> to vector<8x128xf32>
      %33 = arith.addf %31, %32 : vector<8x128xf32>
      %34 = arith.negf %33 : vector<8x128xf32>
      %35 = math.exp %34 : vector<8x128xf32>
      %cst_17 = arith.constant 1.000000e+00 : f32
      %36 = vector.broadcast %cst_17 : f32 to vector<8x128xf32>
      %37 = arith.addf %36, %35 : vector<8x128xf32>
      %38 = arith.divf %36, %37 : vector<8x128xf32>
      %39 = vector.extract_strided_slice %20 {offsets = [0, 256], sizes = [8, 128], strides = [1, 1]} : vector<8x384xf32> to vector<8x128xf32>
      %40 = vector.extract_strided_slice %22 {offsets = [0, 256], sizes = [8, 128], strides = [1, 1]} : vector<8x384xf32> to vector<8x128xf32>
      %c0_18 = arith.constant 0 : index
      %c0_19 = arith.constant 0 : index
      %41 = vector.load %arg6[%c0_18, %c0_19] : memref<1x128xf32, #tpu.memory_space<vmem>>, vector<1x128xf32>
      %42 = vector.broadcast %41 : vector<1x128xf32> to vector<8x128xf32>
      %43 = arith.addf %40, %42 : vector<8x128xf32>
      %44 = arith.mulf %30, %43 : vector<8x128xf32>
      %45 = arith.addf %39, %44 : vector<8x128xf32>
      %46 = math.tanh %45 : vector<8x128xf32>
      %cst_20 = arith.constant 1.000000e+00 : f32
      %47 = vector.broadcast %cst_20 : f32 to vector<8x128xf32>
      %48 = arith.subf %47, %38 : vector<8x128xf32>
      %49 = arith.mulf %48, %46 : vector<8x128xf32>
      %50 = arith.mulf %38, %arg16 : vector<8x128xf32>
      %51 = arith.addf %49, %50 : vector<8x128xf32>
      %52 = vector.broadcast %arg15 : i32 to vector<8x1xi32>
      %53 = arith.cmpi sgt, %2, %52 : vector<8x1xi32>
      %54 = vector.shape_cast %53 : vector<8x1xi1> to vector<8x1xi1>
      %55 = vector.broadcast %54 : vector<8x1xi1> to vector<8x128xi1>
      %56 = arith.select %55, %51, %arg16 : vector<8x128xi1>, vector<8x128xf32>
      %c1_i32_21 = arith.constant 1 : i32
      %57 = arith.subi %0, %c1_i32_21 : i32
      %58 = arith.subi %57, %arg15 : i32
      %59 = arith.index_cast %58 : i32 to index
      %c0_22 = arith.constant 0 : index
      %c0_23 = arith.constant 0 : index
      %60 = vector.load %arg12[%59, %c0_22, %c0_23] : memref<8x8x768xf32, #tpu.memory_space<vmem>>, vector<1x8x768xf32>
      %61 = vector.shape_cast %60 : vector<1x8x768xf32> to vector<8x768xf32>
      %62 = vector.extract_strided_slice %61 {offsets = [0, 384], sizes = [8, 384], strides = [1, 1]} : vector<8x768xf32> to vector<8x384xf32>
      %c0_24 = arith.constant 0 : index
      %c0_25 = arith.constant 0 : index
      %63 = vector.load %arg7[%c0_24, %c0_25] : memref<128x384xf32, #tpu.memory_space<vmem>>, vector<128x384xf32>
      %cst_26 = arith.constant dense<0.000000e+00> : vector<8x384xf32>
      %64 = tpu.matmul %arg17, %63, %cst_26 {dimension_numbers = #tpu.dot_dimension_numbers<[1], [0], [0], [1], [0, 0, 1, 1], [], []>} : vector<8x128xf32>, vector<128x384xf32>, vector<8x384xf32> -> vector<8x384xf32>
      %65 = vector.extract_strided_slice %62 {offsets = [0, 0], sizes = [8, 128], strides = [1, 1]} : vector<8x384xf32> to vector<8x128xf32>
      %66 = vector.extract_strided_slice %64 {offsets = [0, 0], sizes = [8, 128], strides = [1, 1]} : vector<8x384xf32> to vector<8x128xf32>
      %67 = arith.addf %65, %66 : vector<8x128xf32>
      %68 = arith.negf %67 : vector<8x128xf32>
      %69 = math.exp %68 : vector<8x128xf32>
      %cst_27 = arith.constant 1.000000e+00 : f32
      %70 = vector.broadcast %cst_27 : f32 to vector<8x128xf32>
      %71 = arith.addf %70, %69 : vector<8x128xf32>
      %72 = arith.divf %70, %71 : vector<8x128xf32>
      %73 = vector.extract_strided_slice %62 {offsets = [0, 128], sizes = [8, 128], strides = [1, 1]} : vector<8x384xf32> to vector<8x128xf32>
      %74 = vector.extract_strided_slice %64 {offsets = [0, 128], sizes = [8, 128], strides = [1, 1]} : vector<8x384xf32> to vector<8x128xf32>
      %75 = arith.addf %73, %74 : vector<8x128xf32>
      %76 = arith.negf %75 : vector<8x128xf32>
      %77 = math.exp %76 : vector<8x128xf32>
      %cst_28 = arith.constant 1.000000e+00 : f32
      %78 = vector.broadcast %cst_28 : f32 to vector<8x128xf32>
      %79 = arith.addf %78, %77 : vector<8x128xf32>
      %80 = arith.divf %78, %79 : vector<8x128xf32>
      %81 = vector.extract_strided_slice %62 {offsets = [0, 256], sizes = [8, 128], strides = [1, 1]} : vector<8x384xf32> to vector<8x128xf32>
      %82 = vector.extract_strided_slice %64 {offsets = [0, 256], sizes = [8, 128], strides = [1, 1]} : vector<8x384xf32> to vector<8x128xf32>
      %c0_29 = arith.constant 0 : index
      %c0_30 = arith.constant 0 : index
      %83 = vector.load %arg8[%c0_29, %c0_30] : memref<1x128xf32, #tpu.memory_space<vmem>>, vector<1x128xf32>
      %84 = vector.broadcast %83 : vector<1x128xf32> to vector<8x128xf32>
      %85 = arith.addf %82, %84 : vector<8x128xf32>
      %86 = arith.mulf %72, %85 : vector<8x128xf32>
      %87 = arith.addf %81, %86 : vector<8x128xf32>
      %88 = math.tanh %87 : vector<8x128xf32>
      %cst_31 = arith.constant 1.000000e+00 : f32
      %89 = vector.broadcast %cst_31 : f32 to vector<8x128xf32>
      %90 = arith.subf %89, %80 : vector<8x128xf32>
      %91 = arith.mulf %90, %88 : vector<8x128xf32>
      %92 = arith.mulf %80, %arg17 : vector<8x128xf32>
      %93 = arith.addf %91, %92 : vector<8x128xf32>
      %94 = vector.broadcast %58 : i32 to vector<8x1xi32>
      %95 = arith.cmpi sgt, %2, %94 : vector<8x1xi32>
      %96 = vector.shape_cast %95 : vector<8x1xi1> to vector<8x1xi1>
      %97 = vector.broadcast %96 : vector<8x1xi1> to vector<8x128xi1>
      %98 = arith.select %97, %93, %arg17 : vector<8x128xi1>, vector<8x128xf32>
      scf.yield %56, %98 : vector<8x128xf32>, vector<8x128xf32>
    }
    %10 = tpu.concatenate %9#1, %9#0 in 1 : vector<8x128xf32>, vector<8x128xf32> -> vector<8x256xf32>
    %c0_4 = arith.constant 0 : index
    %c0_5 = arith.constant 0 : index
    %11 = vector.load %arg9[%c0_4, %c0_5] : memref<256x128xf32, #tpu.memory_space<vmem>>, vector<256x128xf32>
    %cst_6 = arith.constant dense<0.000000e+00> : vector<8x128xf32>
    %12 = tpu.matmul %10, %11, %cst_6 {dimension_numbers = #tpu.dot_dimension_numbers<[1], [0], [0], [1], [0, 0, 1, 1], [], []>} : vector<8x256xf32>, vector<256x128xf32>, vector<8x128xf32> -> vector<8x128xf32>
    %c0_7 = arith.constant 0 : index
    %c0_8 = arith.constant 0 : index
    %13 = vector.load %arg10[%c0_7, %c0_8] : memref<1x128xf32, #tpu.memory_space<vmem>>, vector<1x128xf32>
    %14 = vector.broadcast %13 : vector<1x128xf32> to vector<8x128xf32>
    %15 = arith.addf %12, %14 : vector<8x128xf32>
    %c0_9 = arith.constant 0 : index
    %c0_10 = arith.constant 0 : index
    %16 = vector.load %arg11[%c0_9, %c0_10] : memref<8x128xf32, #tpu.memory_space<vmem>>, vector<8x128xf32>
    tpu.vector_store %arg11[%c0_9, %c0_10], %15 {strides = array<i32>} : memref<8x128xf32, #tpu.memory_space<vmem>>, vector<8x128xf32>,
    return
  }
}

</mosaic_0001>

<bundles_post_ra>
// kernel: tpu_custom_call.1
= control target key start
LH: loop header
LB: loop body
LE: loop exit
PB: predicated region body
PF: predicated region fallthrough
CT: control target
= control target key end

     0   :  { %16 = vsyncpa [#allocation8], 0  ;;  %s2675_s0 = inlined_call_operand.vmem [shape: s32[2], index: 0, kind: input, shape index: {}]   ;;  %s2676_s1 = inlined_call_operand.vmem [shape: s32[8,1], index: 1, kind: input, shape index: {}]   ;;  %s2677_s2 = inlined_call_operand.hbm [shape: f32[64,128], index: 2, kind: input, shape index: {}]   ;;  %s2678_s3 = inlined_call_operand.hbm [shape: f32[128,768], index: 3, kind: input, shape index: {}]   ;;  %s2679_s4 = inlined_call_operand.vmem [shape: f32[1,768], index: 4, kind: input, shape index: {}]   ;;  %s2680_s5 = inlined_call_operand.hbm [shape: f32[128,384], index: 5, kind: input, shape index: {}]   ;;  %s2681_s6 = inlined_call_operand.vmem [shape: f32[1,128], index: 6, kind: input, shape index: {}]   ;;  %s2682_s7 = inlined_call_operand.hbm [shape: f32[128,384], index: 7, kind: input, shape index: {}]   ;;  %s2683_s8 = inlined_call_operand.vmem [shape: f32[1,128], index: 8, kind: input, shape index: {}]   ;;  %s2684_s9 = inlined_call_operand.hbm [shape: f32[256,128], index: 9, kind: input, shape index: {}]   ;;  %s2685_s10 = inlined_call_operand.vmem [shape: f32[1,128], index: 10, kind: input, shape index: {}]   ;;  %s2686_s11 = inlined_call_operand.hbm [shape: f32[8,128], index: 11, kind: output, shape index: {}]  }
   0x1   :  { %17 = vsyncpa [#allocation6], 0 }
   0x2   :  { %18 = vsyncpa [#allocation11], 0 }
   0x3   :  { %19 = vsyncpa [#allocation14], 0 }
   0x4   :  { %20 = vsyncpa [#allocation7], 0  ;;  %s2188_s17 = smov [#allocation10]   ;;  %s27_s21 = sshll.u32 %s2675_s0, 4  ;;  %s28_s21 = int_to_ptr.vmem [resolvable:$true] %s27_s21 }
   0x5   :  { %s52_s18 = sshll.u32 %s2188_s17, 4  ;;  %s1955_s24 = scalar_lea.hbm %s2680_s5, 6144  ;;  %s53_s18 = int_to_ptr.vmem [resolvable:$true] %s52_s18 }
   0x6   :  { %p1956_p0 = scmp.ne.s32.totalorder %s2680_s5, %s1955_s24  ;;  %p1959_p1 = scmp.lt.u32.totalorder %s1955_s24, %s2680_s5 }
   0x8   :  { %p1961_p2 = pnand %p1959_p1, %p1956_p0 }
   0xa   :  { %1964 = shalt.err (!%p1961_p2)
}
   0xb   :  { %s1965_s29 = scalar_lea.vmem %s53_s18, 6144  ;;  %p1970_p4 = scmp.lt.s32.totalorder %s53_s18, %s53_s18 }
   0xc   :  { %p1966_p3 = scmp.ne.s32.totalorder %s53_s18, %s1965_s29  ;;  %p1971_p5 = scmp.lt.s32.totalorder %s1965_s29, %s1965_s29 }
   0xe   :  { %p1972_p6 = por %p1971_p5, %p1970_p4 }
  0x10   :  { %p1973_p7 = pnand %p1972_p6, %p1966_p3 }
  0x12   :  { %1976 = shalt.err (!%p1973_p7)
}
  0x13   :  { %s2189_s0 = smov 384   ;;  %s2190_s30 = smov 24  }
  0x14   :  { %58 = dma.hbm_to_vmem [thread:$0]  %s2680_s5, 6144, %s53_s18, [#allocation11], %s2189_s0, %s2189_s0, %s2190_s30  }
  0x15   :  { %s1977_s14 = scalar_lea.vmem %s28_s21, 16  ;;  %p1982_p9 = scmp.lt.s32.totalorder %s28_s21, %s28_s21 }
  0x16   :  { %p1978_p8 = scmp.ne.s32.totalorder %s28_s21, %s1977_s14  ;;  %p1983_p10 = scmp.lt.s32.totalorder %s1977_s14, %s1977_s14 }
  0x18   :  { %p1984_p11 = por %p1983_p10, %p1982_p9 }
  0x1a   :  { %p1985_p12 = pnand %p1984_p11, %p1978_p8 }
  0x1c   :  { %1988 = shalt.err (!%p1985_p12)
}
  0x1d   :  { %s2191_s15 = smov [#allocation5]   ;;  %s2192_s16 = smov [#allocation9]  }
  0x1e   :  { %30 = dma.vmem_to_smem %s28_s21, 16, %s2191_s15, [#allocation8]  }
  0x1f   :  { %s38_s17 = sshll.u32 %s2192_s16, 4  ;;  %s1989_s22 = scalar_lea.hbm %s2678_s3, 12288  ;;  %s39_s17 = int_to_ptr.vmem [resolvable:$true] %s38_s17 }
  0x20   :  { %p1990_p13 = scmp.ne.s32.totalorder %s2678_s3, %s1989_s22  ;;  %p1993_p0 = scmp.lt.u32.totalorder %s1989_s22, %s2678_s3 }
  0x22   :  { %p1995_p1 = pnand %p1993_p0, %p1990_p13 }
  0x24   :  { %1998 = shalt.err (!%p1995_p1)
}
  0x25   :  { %s1999_s25 = scalar_lea.vmem %s39_s17, 12288  ;;  %p2004_p3 = scmp.lt.s32.totalorder %s39_s17, %s39_s17 }
  0x26   :  { %p2000_p2 = scmp.ne.s32.totalorder %s39_s17, %s1999_s25  ;;  %p2005_p4 = scmp.lt.s32.totalorder %s1999_s25, %s1999_s25 }
  0x28   :  { %p2006_p5 = por %p2005_p4, %p2004_p3 }
  0x2a   :  { %p2007_p6 = pnand %p2006_p5, %p2000_p2 }
  0x2c   :  { %2010 = shalt.err (!%p2007_p6)
}
  0x2d   :  { %s2193_s21 = smov 768   ;;  %s2194_s26 = smov 48  }
  0x2e   :  { %44 = dma.hbm_to_vmem [thread:$0]  %s2678_s3, 12288, %s39_s17, [#allocation6], %s2193_s21, %s2193_s21, %s2194_s26  }
  0x2f   :  { %s2195_s29 = smov [#allocation12]   ;;  %s2196_s13 = smov [#allocation13]  }
  0x30   :  { %s66_s12 = sshll.u32 %s2195_s29, 4  ;;  %s80_s14 = sshll.u32 %s2196_s13, 4  ;;  %s67_s12 = int_to_ptr.vmem [resolvable:$true] %s66_s12  ;;  %s81_s14 = int_to_ptr.vmem [resolvable:$true] %s80_s14 }
  0x31   :  { %s2011_s19 = scalar_lea.hbm %s2682_s7, 6144 }
  0x32   :  { %p2012_p7 = scmp.ne.s32.totalorder %s2682_s7, %s2011_s19  ;;  %p2015_p8 = scmp.lt.u32.totalorder %s2011_s19, %s2682_s7 }
  0x34   :  { %p2017_p9 = pnand %p2015_p8, %p2012_p7 }
  0x36   :  { %2020 = shalt.err (!%p2017_p9)
}
  0x37   :  { %s2021_s3 = scalar_lea.vmem %s67_s12, 6144  ;;  %p2026_p11 = scmp.lt.s32.totalorder %s67_s12, %s67_s12 }
  0x38   :  { %p2022_p10 = scmp.ne.s32.totalorder %s67_s12, %s2021_s3  ;;  %p2027_p12 = scmp.lt.s32.totalorder %s2021_s3, %s2021_s3 }
  0x3a   :  { %p2028_p13 = por %p2027_p12, %p2026_p11 }
  0x3c   :  { %p2029_p0 = pnand %p2028_p13, %p2022_p10 }
  0x3e   :  { %2032 = shalt.err (!%p2029_p0)
}
  0x3f   :  { %72 = dma.hbm_to_vmem [thread:$0]  %s2682_s7, 6144, %s67_s12, [#allocation11], %s2189_s0, %s2189_s0, %s2190_s30  }
  0x40   :  { %s2033_s21 = scalar_lea.hbm %s2684_s9, 4096 }
  0x41   :  { %p2034_p1 = scmp.ne.s32.totalorder %s2684_s9, %s2033_s21  ;;  %p2037_p2 = scmp.lt.u32.totalorder %s2033_s21, %s2684_s9 }
  0x43   :  { %p2039_p3 = pnand %p2037_p2, %p2034_p1 }
  0x45   :  { %2042 = shalt.err (!%p2039_p3)
}
  0x46   :  { %s2043_s13 = scalar_lea.vmem %s81_s14, 4096  ;;  %p2048_p5 = scmp.lt.s32.totalorder %s81_s14, %s81_s14 }
  0x47   :  { %p2044_p4 = scmp.ne.s32.totalorder %s81_s14, %s2043_s13  ;;  %p2049_p6 = scmp.lt.s32.totalorder %s2043_s13, %s2043_s13 }
  0x49   :  { %p2050_p7 = por %p2049_p6, %p2048_p5 }
  0x4b   :  { %p2051_p8 = pnand %p2050_p7, %p2044_p4 }
  0x4d   :  { %2054 = shalt.err (!%p2051_p8)
}
  0x4e   :  { %s2197_s7 = smov 128   ;;  %s2198_s0 = smov 8  }
  0x4f   :  { %86 = dma.hbm_to_vmem [thread:$0]  %s2684_s9, 4096, %s81_s14, [#allocation14], %s2197_s7, %s2197_s7, %s2198_s0  }
  0x50   :  { %2152 = dma.done.wait [#allocation8], 16  }
  0x51   :  { %2153 = vsyncadd [#allocation8], 4294967280 }
  0x52   :  { %2154 = dma.done.wait [#allocation6], 12288  }
  0x53   :  { %2155 = vsyncadd [#allocation6], 4294955008 }
  0x54   :  { %2156 = dma.done.wait [#allocation11], 12288  }
  0x55   :  { %2157 = vsyncadd [#allocation11], 4294955008 }
  0x56   :  { %2158 = dma.done.wait [#allocation14], 4096  }
  0x57   :  { %2159 = vsyncadd [#allocation14], 4294963200 }
  0x58   :  { %104 = sfence }
  0x59   :  { %s2323_s15 = sld [smem:[#allocation5]]  ;;  %s2325_s16 = sld [smem:[#allocation5 + $0x1]]  ;;  %v2330_v0 = vld [vmem:[%s2676_s1] sm:$0xff] }
  0x5f   :  { %p1389_p9 = scmp.le.s32.totalorder %s2325_s16, 0 }
  0x60   :  { %s2199_s9 = smov (!%p1389_p9), [#allocation3]   ;;  %s2340_s24 = scalar_lea.hbm (!%p1389_p9), %s2677_s2, 1024 }
  0x61   :  { %111 = sbr.rel (%p1389_p9) target bundleno = 446 (0x1be), region = 65  ;;  %s119_s14 = sshll.u32 (!%p1389_p9), %s2199_s9, 4  ;;  %s2335_s14 = int_to_ptr.vmem [resolvable:$true] %s119_s14 }
  0x62   :  { %p2056_p10 = scmp.ne.s32.totalorder (!%p1389_p9), %s2677_s2, %s2340_s24  ;;  %p2059_p11 = scmp.lt.u32.totalorder (!%p1389_p9), %s2340_s24, %s2677_s2 }
  0x64   :  { %p2061_p12 = pnand (!%p1389_p9), %p2059_p11, %p2056_p10 }
  0x68   :  { %2064 = shalt.err (!%p2061_p12)  }
  0x69   :  { %s2065_s18 = scalar_lea.vmem %s2335_s14, 1024  ;;  %s2069_s25 = scalar_lea.vmem %s2335_s14, 2048 }
  0x6a   :  { %p2066_p13 = scmp.ne.s32.totalorder %s2335_s14, %s2065_s18  ;;  %p2070_p0 = scmp.lt.s32.totalorder %s2335_s14, %s2335_s14 }
  0x6b   :  { %p2071_p1 = scmp.lt.s32.totalorder %s2069_s25, %s2065_s18 }
  0x6d   :  { %p2072_p2 = por %p2071_p1, %p2070_p0 }
  0x6f   :  { %p2073_p3 = pnand %p2072_p2, %p2066_p13 }
  0x71   :  { %2076 = shalt.err (!%p2073_p3)  }
  0x72   :  { %122 = dma.hbm_to_vmem [thread:$0]  %s2677_s2, 1024, %s2335_s14, [#allocation4] }
  0x73   :  { %1374 = sbr.rel (%p1389_p9) target bundleno = 446 (0x1be), region = 120  ;;  %s2363_s27 = smov (!%p1389_p9), 0  }
  0x7a LB: > { %s129_s28 = sand.u32 1, %s2166_s27  ;;  %s2166_s27 = sphi %s2363_s27, %s2687_s27  }
  0x7b   : > { %s1391_s29 = sshll.u32 %s129_s28, 6  ;;  %s132_s7 = scalar_lea.sflag [#allocation4], %s129_s28 }
  0x7c   : > { %s2369_s13 = scalar_lea.vmem [#allocation3], %s1391_s29 }
  0x7d   : > { %2160 = dma.done.wait %s132_s7, 1024 }
  0x7e   : > { %2161 = vsyncadd %s132_s7, 4294966272  ;;  %s2372_s0 = sadd.s32 1, %s2166_s27   ;;  %s141_s30 = ssub.s32 1, %s129_s28  ;;  %v2200_v1 = vmov 0.0   ;;  %v168_v2 = vld [vmem:[#allocation9 + $0x8] sm:$0xff]  ;;  %v174_v3 = vld [vmem:[#allocation9 + $0x38] sm:$0xff] }
  0x7f   : > { %p1867_p5 = scmp.lt.s32.totalorder %s2372_s0, %s2325_s16  ;;  %359 = vmatprep.mubr.f32.mxu0 %v2200_v1  ;;  %472 = vmatprep.mubr.f32.mxu1 %v2200_v1  ;;  %s1393_s12 = sshll.u32 %s2166_s27, 10  ;;  %v170_v4 = vld [vmem:[#allocation9 + $0x18] sm:$0xff] }
  0x80   : > { %s1394_s19 = sshll.u32 %s141_s30, 6  ;;  %s1333_s22 = scalar_lea.hbm %s2677_s2, %s1393_s12 }
  0x81   : > { %s2384_s23 = scalar_lea.hbm %s1333_s22, 1024  ;;  %s146_s3 = scalar_lea.vmem [#allocation3], %s1394_s19 }
  0x82   : > { %s155_s17 = sshll.u32 %s146_s3, 4  ;;  %s147_s1 = scalar_lea.sflag [#allocation4], %s141_s30  ;;  %s156_s17 = int_to_ptr.vmem [resolvable:$true] %s155_s17 }
  0x83   : > { %s2105_s5 = scalar_lea.hbm %s1333_s22, 2048  ;;  %p2082_p9 = scmp.lt.u32.totalorder %s2384_s23, %s2677_s2 }
  0x84   : > { %p2078_p6 = scmp.ne.s32.totalorder %s2384_s23, %s2105_s5  ;;  %p2083_p10 = scmp.lt.u32.totalorder %s2340_s24, %s2105_s5 }
  0x85   : > { %p2085_p12 = scmp.lt.u32.totalorder %s2105_s5, %s2384_s23 }
  0x86   : > { %p2079_p7 = pnand %p2078_p6, %p1867_p5  ;;  %p2084_p11 = por %p2083_p10, %p2082_p9 }
  0x88   : > { %p2080_p8 = pneg %p2079_p7  ;;  %p2086_p13 = por %p2085_p12, %p2084_p11 }
  0x8a   : > { %p2087_p0 = pnand %p2086_p13, %p2080_p8 }
  0x8c   : > { %2090 = shalt.err (!%p2087_p0)  }
  0x8d   : > { %s2091_s26 = scalar_lea.vmem %s156_s17, 1024  ;;  %p2098_p6 = scmp.lt.s32.totalorder %s156_s17, %s2335_s14 }
  0x8e   : > { %p2092_p1 = scmp.ne.s32.totalorder %s156_s17, %s2091_s26  ;;  %p2099_p7 = scmp.lt.s32.totalorder %s2069_s25, %s2091_s26 }
  0x90   : > { %p2093_p2 = pnand %p2092_p1, %p1867_p5  ;;  %p2100_p4 = por %p2099_p7, %p2098_p6 }
  0x92   : > { %p2094_p3 = pneg %p2093_p2 }
  0x94   : > { %p2101_p9 = pnand %p2100_p4, %p2094_p3 }
  0x96   : > { %2104 = shalt.err (!%p2101_p9)  }
  0x97   : > { %1866 = dma.hbm_to_vmem [thread:$0]  (%p1867_p5), %s2384_s23, 1024, %s156_s17, %s147_s1  ;;  %v1609_v5 = vpack.c.bf16 %v174_v3, %v168_v2  ;;  %v176_v6 = vld [vmem:[#allocation9 + $0x48] sm:$0xff]  ;;  %v167_v7 = vld [vmem:[#allocation9] sm:$0xff]  ;;  %v173_v8 = vld [vmem:[#allocation9 + $0x30] sm:$0xff] }
  0x98   : > { %v1641_v9 = vpack.c.bf16 %v176_v6, %v170_v4  ;;  %v1611_v10 = vpack.c.bf16 %v173_v8, %v167_v7  ;;  %v169_v11 = vld [vmem:[#allocation9 + $0x10] sm:$0xff]  ;;  %v175_v12 = vld [vmem:[#allocation9 + $0x40] sm:$0xff]  ;;  %v180_v13 = vld [vmem:[#allocation9 + $0x68] sm:$0xff]  ;;  %p2688_p4 = scmp.ge.s32.totalorder %s2372_s0, %s2325_s16 }
  0x99   : > { %1610 = vmatprep.subr.bf16.mxu0 %v1609_v5  ;;  %v1643_v14 = vpack.c.bf16 %v175_v12, %v169_v11  ;;  %v186_v15 = vld [vmem:[#allocation9 + $0x98] sm:$0xff]  ;;  %v188_v17 = vld [vmem:[#allocation9 + $0xa8] sm:$0xff]  ;;  %v179_v20 = vld [vmem:[#allocation9 + $0x60] sm:$0xff] }
  0x9a   : > { %v182_v16 = vld [vmem:[#allocation9 + $0x78] sm:$0xff]  ;;  %1642 = vmatprep.subr.bf16.mxu1 %v1641_v9  ;;  %1612 = vmatpush1.bf16.msra.mxu0 %v1611_v10  ;;  %v1613_v18 = vpack.c.bf16 %v186_v15, %v180_v13  ;;  %v185_v21 = vld [vmem:[#allocation9 + $0x90] sm:$0xff]  ;;  %v187_v24 = vld [vmem:[#allocation9 + $0xa0] sm:$0xff] }
  0x9b   : > { %v1645_v19 = vpack.c.bf16 %v188_v17, %v182_v16  ;;  %v181_v22 = vld [vmem:[#allocation9 + $0x70] sm:$0xff]  ;;  %1644 = vmatpush1.bf16.msra.mxu1 %v1643_v14  ;;  %v1615_v23 = vpack.c.bf16 %v185_v21, %v179_v20  ;;  %v192_v25 = vld [vmem:[#allocation9 + $0xc8] sm:$0xff]  ;;  %v198_v26 = vld [vmem:[#allocation9 + $0xf8] sm:$0xff] }
  0x9c   : > { %1614 = vmatprep.subr.bf16.mxu0 %v1613_v18  ;;  %v1647_v27 = vpack.c.bf16 %v187_v24, %v181_v22  ;;  %v1617_v28 = vpack.c.bf16 %v198_v26, %v192_v25  ;;  %v194_v29 = vld [vmem:[#allocation9 + $0xd8] sm:$0xff]  ;;  %v200_v30 = vld [vmem:[#allocation9 + $0x108] sm:$0xff]  ;;  %v191_v31 = vld [vmem:[#allocation9 + $0xc0] sm:$0xff] }
  0x9d   : > { %1646 = vmatprep.subr.bf16.mxu1 %v1645_v19  ;;  %v1649_v32 = vpack.c.bf16 %v200_v30, %v194_v29  ;;  %v197_v33 = vld [vmem:[#allocation9 + $0xf0] sm:$0xff]  ;;  %v199_v35 = vld [vmem:[#allocation9 + $0x100] sm:$0xff]  ;;  %v204_v37 = vld [vmem:[#allocation9 + $0x128] sm:$0xff] }
  0x9e   : > { %v193_v34 = vld [vmem:[#allocation9 + $0xd0] sm:$0xff]  ;;  %1616 = vmatpush1.bf16.msra.mxu0 %v1615_v23  ;;  %v1619_v36 = vpack.c.bf16 %v197_v33, %v191_v31  ;;  %v210_v38 = vld [vmem:[#allocation9 + $0x158] sm:$0xff]  ;;  %v212_v42 = vld [vmem:[#allocation9 + $0x168] sm:$0xff] }
  0x9f   : > { %v206_v39 = vld [vmem:[#allocation9 + $0x138] sm:$0xff]  ;;  %1648 = vmatpush1.bf16.msra.mxu1 %v1647_v27  ;;  %1618 = vmatprep.subr.bf16.mxu0 %v1617_v28  ;;  %v1651_v40 = vpack.c.bf16 %v199_v35, %v193_v34  ;;  %v1621_v41 = vpack.c.bf16 %v210_v38, %v204_v37  ;;  %v203_v43 = vld [vmem:[#allocation9 + $0x120] sm:$0xff]  ;;  %v209_v44 = vld [vmem:[#allocation9 + $0x150] sm:$0xff] }
  0xa0   : > { %1650 = vmatprep.subr.bf16.mxu1 %v1649_v32  ;;  %v1653_v45 = vpack.c.bf16 %v212_v42, %v206_v39  ;;  %v205_v46 = vld [vmem:[#allocation9 + $0x130] sm:$0xff]  ;;  %v211_v47 = vld [vmem:[#allocation9 + $0x160] sm:$0xff]  ;;  %v216_v48 = vld [vmem:[#allocation9 + $0x188] sm:$0xff]  ;;  %v1623_v52 = vpack.c.bf16 %v209_v44, %v203_v43 }
  0xa1   : > { %v222_v49 = vld [vmem:[#allocation9 + $0x1b8] sm:$0xff]  ;;  %v224_v51 = vld [vmem:[#allocation9 + $0x1c8] sm:$0xff]  ;;  %v1655_v53 = vpack.c.bf16 %v211_v47, %v205_v46  ;;  %v215_v55 = vld [vmem:[#allocation9 + $0x180] sm:$0xff] }
  0xa2   : > { %v218_v50 = vld [vmem:[#allocation9 + $0x198] sm:$0xff]  ;;  %1620 = vmatpush1.bf16.msra.mxu0 %v1619_v36  ;;  %v1625_v54 = vpack.c.bf16 %v222_v49, %v216_v48  ;;  %v221_v56 = vld [vmem:[#allocation9 + $0x1b0] sm:$0xff]  ;;  %v223_v59 = vld [vmem:[#allocation9 + $0x1c0] sm:$0xff] }
  0xa3   : > { %1652 = vmatpush1.bf16.msra.mxu1 %v1651_v40  ;;  %1622 = vmatprep.subr.bf16.mxu0 %v1621_v41  ;;  %v217_v57 = vld [vmem:[#allocation9 + $0x190] sm:$0xff]  ;;  %v1657_v58 = vpack.c.bf16 %v224_v51, %v218_v50  ;;  %v228_v60 = vld [vmem:[#allocation9 + $0x1e8] sm:$0xff]  ;;  %v234_v61 = vld [vmem:[#allocation9 + $0x218] sm:$0xff]  ;;  %v1627_v2 = vpack.c.bf16 %v221_v56, %v215_v55 }
  0xa4   : > { %1654 = vmatprep.subr.bf16.mxu1 %v1653_v45  ;;  %v230_v62 = vld [vmem:[#allocation9 + $0x1f8] sm:$0xff]  ;;  %v236_v63 = vld [vmem:[#allocation9 + $0x228] sm:$0xff]  ;;  %v1659_v3 = vpack.c.bf16 %v223_v59, %v217_v57  ;;  %v1629_v4 = vpack.c.bf16 %v234_v61, %v228_v60  ;;  %v227_v5 = vld [vmem:[#allocation9 + $0x1e0] sm:$0xff] }
  0xa5   : > { %v233_v6 = vld [vmem:[#allocation9 + $0x210] sm:$0xff]  ;;  %v1661_v8 = vpack.c.bf16 %v236_v63, %v230_v62  ;;  %v235_v9 = vld [vmem:[#allocation9 + $0x220] sm:$0xff]  ;;  %v240_v10 = vld [vmem:[#allocation9 + $0x248] sm:$0xff] }
  0xa6   : > { %1624 = vmatpush1.bf16.msra.mxu0 %v1623_v52  ;;  %v229_v7 = vld [vmem:[#allocation9 + $0x1f0] sm:$0xff]  ;;  %v246_v11 = vld [vmem:[#allocation9 + $0x278] sm:$0xff]  ;;  %v248_v13 = vld [vmem:[#allocation9 + $0x288] sm:$0xff]  ;;  %v1631_v14 = vpack.c.bf16 %v233_v6, %v227_v5 }
  0xa7   : > { %1656 = vmatpush1.bf16.msra.mxu1 %v1655_v53  ;;  %1626 = vmatprep.subr.bf16.mxu0 %v1625_v54  ;;  %v242_v12 = vld [vmem:[#allocation9 + $0x258] sm:$0xff]  ;;  %v1663_v15 = vpack.c.bf16 %v235_v9, %v229_v7  ;;  %v1633_v16 = vpack.c.bf16 %v246_v11, %v240_v10  ;;  %v239_v17 = vld [vmem:[#allocation9 + $0x240] sm:$0xff]  ;;  %v245_v18 = vld [vmem:[#allocation9 + $0x270] sm:$0xff] }
  0xa8   : > { %1658 = vmatprep.subr.bf16.mxu1 %v1657_v58  ;;  %v241_v19 = vld [vmem:[#allocation9 + $0x250] sm:$0xff]  ;;  %v1665_v20 = vpack.c.bf16 %v248_v13, %v242_v12  ;;  %v247_v21 = vld [vmem:[#allocation9 + $0x280] sm:$0xff]  ;;  %v252_v22 = vld [vmem:[#allocation9 + $0x2a8] sm:$0xff]  ;;  %v1635_v26 = vpack.c.bf16 %v245_v18, %v239_v17 }
  0xa9   : > { %v258_v23 = vld [vmem:[#allocation9 + $0x2d8] sm:$0xff]  ;;  %v260_v25 = vld [vmem:[#allocation9 + $0x2e8] sm:$0xff]  ;;  %v1667_v27 = vpack.c.bf16 %v247_v21, %v241_v19  ;;  %v251_v29 = vld [vmem:[#allocation9 + $0x2a0] sm:$0xff] }
  0xaa   : > { %1628 = vmatpush1.bf16.msra.mxu0 %v1627_v2  ;;  %v254_v24 = vld [vmem:[#allocation9 + $0x2b8] sm:$0xff]  ;;  %v1637_v28 = vpack.c.bf16 %v258_v23, %v252_v22  ;;  %v257_v30 = vld [vmem:[#allocation9 + $0x2d0] sm:$0xff]  ;;  %v259_v33 = vld [vmem:[#allocation9 + $0x2e0] sm:$0xff] }
  0xab   : > { %1660 = vmatpush1.bf16.msra.mxu1 %v1659_v3  ;;  %1630 = vmatprep.subr.bf16.mxu0 %v1629_v4  ;;  %v253_v31 = vld [vmem:[#allocation9 + $0x2b0] sm:$0xff]  ;;  %v1669_v32 = vpack.c.bf16 %v260_v25, %v254_v24  ;;  %v172_v34 = vld [vmem:[#allocation9 + $0x28] sm:$0xff]  ;;  %v178_v35 = vld [vmem:[#allocation9 + $0x58] sm:$0xff]  ;;  %v1639_v36 = vpack.c.bf16 %v257_v30, %v251_v29  ;;  %v265_v30 = vlaneseq }
  0xac   : > { %1662 = vmatprep.subr.bf16.mxu1 %v1661_v8  ;;  %v1671_v37 = vpack.c.bf16 %v259_v33, %v253_v31  ;;  %v1673_v38 = vpack.c.bf16 %v178_v35, %v172_v34  ;;  %v171_v39 = vld [vmem:[#allocation9 + $0x20] sm:$0xff]  ;;  %v177_v40 = vld [vmem:[#allocation9 + $0x50] sm:$0xff]  ;;  %v184_v41 = vld [vmem:[#allocation9 + $0x88] sm:$0xff] }
  0xad   : > { %v190_v42 = vld [vmem:[#allocation9 + $0xb8] sm:$0xff]  ;;  %v2407_v43 = vld [vmem:[%s2369_s13] sm:$0xff]  ;;  %v1675_v44 = vpack.c.bf16 %v177_v40, %v171_v39  ;;  %v189_v46 = vld [vmem:[#allocation9 + $0xb0] sm:$0xff]  ;;  %v2456_v31 = vshrl.u32 %v265_v30, 7 }
  0xae   : > { %1632 = vmatpush1.bf16.msra.mxu0 %v1631_v14  ;;  %v183_v45 = vld [vmem:[#allocation9 + $0x80] sm:$0xff]  ;;  %v1677_v47 = vpack.c.bf16 %v190_v42, %v184_v41  ;;  %v196_v48 = vld [vmem:[#allocation9 + $0xe8] sm:$0xff]  ;;  %v202_v49 = vld [vmem:[#allocation9 + $0x118] sm:$0xff] }
  0xaf   : > { %1664 = vmatpush1.bf16.msra.mxu1 %v1663_v15  ;;  %1634 = vmatprep.subr.bf16.mxu0 %v1633_v16  ;;  %v2412_v50 = vld [vmem:[%s2369_s13 + $0x8] sm:$0xff]  ;;  %v1679_v51 = vpack.c.bf16 %v189_v46, %v183_v45  ;;  %v195_v52 = vld [vmem:[#allocation9 + $0xe0] sm:$0xff]  ;;  %v201_v53 = vld [vmem:[#allocation9 + $0x110] sm:$0xff]  ;;  %v1681_v54 = vpack.c.bf16 %v202_v49, %v196_v48  ;;  %v275_v34 = vsub.s32 2, %v2456_v31  ;;  %v271_v35 = vsub.s32 1, %v2456_v31 }
  0xb0   : > { %1666 = vmatprep.subr.bf16.mxu1 %v1665_v20  ;;  %v208_v55 = vld [vmem:[#allocation9 + $0x148] sm:$0xff]  ;;  %v214_v56 = vld [vmem:[#allocation9 + $0x178] sm:$0xff]  ;;  %v2419_v57 = vld [vmem:[%s2369_s13 + $0x10] sm:$0xff]  ;;  %v1683_v58 = vpack.c.bf16 %v201_v53, %v195_v52  ;;  %v283_v30 = vsub.s32 4, %v2456_v31 }
  0xb1   : > { %v207_v59 = vld [vmem:[#allocation9 + $0x140] sm:$0xff]  ;;  %v213_v60 = vld [vmem:[#allocation9 + $0x170] sm:$0xff]  ;;  %v1685_v61 = vpack.c.bf16 %v214_v56, %v208_v55  ;;  %v220_v62 = vld [vmem:[#allocation9 + $0x1a8] sm:$0xff] }
  0xb2   : > { %1636 = vmatpush1.bf16.msra.mxu0 %v1635_v26  ;;  %v226_v63 = vld [vmem:[#allocation9 + $0x1d8] sm:$0xff]  ;;  %v1687_v3 = vpack.c.bf16 %v213_v60, %v207_v59  ;;  %v219_v4 = vld [vmem:[#allocation9 + $0x1a0] sm:$0xff]  ;;  %v225_v5 = vld [vmem:[#allocation9 + $0x1d0] sm:$0xff] }
  0xb3   : > { %1668 = vmatpush1.bf16.msra.mxu1 %v1667_v27  ;;  %1638 = vmatprep.subr.bf16.mxu0 %v1637_v28  ;;  %v2426_v2 = vld [vmem:[%s2369_s13 + $0x18] sm:$0xff]  ;;  %v1689_v6 = vpack.c.bf16 %v226_v63, %v220_v62  ;;  %v232_v7 = vld [vmem:[#allocation9 + $0x208] sm:$0xff]  ;;  %v163_v9 = vld [vmem:[%s2369_s13 + $0x20] sm:$0xff]  ;;  %v1691_v10 = vpack.c.bf16 %v225_v5, %v219_v4 }
  0xb4   : > { %1670 = vmatprep.subr.bf16.mxu1 %v1669_v32  ;;  %v238_v8 = vld [vmem:[#allocation9 + $0x238] sm:$0xff]  ;;  %v231_v11 = vld [vmem:[#allocation9 + $0x200] sm:$0xff]  ;;  %v237_v12 = vld [vmem:[#allocation9 + $0x230] sm:$0xff]  ;;  %v267_v32 = vsub.s32 0, %v2456_v31 }
  0xb5   : > { %v1693_v13 = vpack.c.bf16 %v238_v8, %v232_v7  ;;  %v244_v14 = vld [vmem:[#allocation9 + $0x268] sm:$0xff]  ;;  %v250_v15 = vld [vmem:[#allocation9 + $0x298] sm:$0xff]  ;;  %v1695_v17 = vpack.c.bf16 %v237_v12, %v231_v11  ;;  %v243_v18 = vld [vmem:[#allocation9 + $0x260] sm:$0xff] }
  0xb6   : > { %1640 = vmatpush1.bf16.msra.mxu0 %v1639_v36  ;;  %v164_v16 = vld [vmem:[%s2369_s13 + $0x28] sm:$0xff]  ;;  %v249_v19 = vld [vmem:[#allocation9 + $0x290] sm:$0xff]  ;;  %v1697_v20 = vpack.c.bf16 %v250_v15, %v244_v14  ;;  %v262_v22 = vld [vmem:[#allocation9 + $0x2f8] sm:$0xff]  ;;  %v279_v36 = vsub.s32 3, %v2456_v31 }
  0xb7   : > { %1672 = vmatpush1.bf16.msra.mxu1 %v1671_v37  ;;  %1674 = vmatprep.subr.bf16.mxu0 %v1673_v38  ;;  %v256_v21 = vld [vmem:[#allocation9 + $0x2c8] sm:$0xff]  ;;  %v165_v23 = vld [vmem:[%s2369_s13 + $0x30] sm:$0xff]  ;;  %v1699_v24 = vpack.c.bf16 %v249_v19, %v243_v18  ;;  %v255_v25 = vld [vmem:[#allocation9 + $0x2c0] sm:$0xff] }
  0xb8   : > { %1849 = vmatprep.subr.bf16.mxu1 %v1673_v38  ;;  %v261_v26 = vld [vmem:[#allocation9 + $0x2f0] sm:$0xff]  ;;  %v1701_v27 = vpack.c.bf16 %v262_v22, %v256_v21  ;;  %v166_v28 = vld [vmem:[%s2369_s13 + $0x38] sm:$0xff]  ;;  %v2462_v33 = vld [vmem:[%s2679_s4] sm:$0x3f]  ;;  %s1467_s13 = smul.u32 384, %s2166_s27 }
  0xb9   : > { %360 = vmatmul.mubr.f32.vlgmr.msra.gmra.mrb[0].mxu0 %v2407_v43  ;;  %v1703_v29 = vpack.c.bf16 %v261_v26, %v255_v25  ;;  %v2472_v37 = vrot.slane %v2462_v33, %v275_v34  ;;  %v2475_v38 = vrot.slane %v2462_v33, %v271_v35  ;;  %v2478_v39 = vrot.slane %v2462_v33, %v279_v36 }
  0xba   : > { %473 = vmatmul.mubr.f32.vlgmr.msra.gmra.mrb[0].mxu1 %v2407_v43  ;;  %1676 = vmatpush1.bf16.msra.mxu0 %v1675_v44  ;;  %s2483_s27 = scalar_lea.vmem [#allocation2], %s1467_s13  ;;  %v287_v36 = vsub.s32 5, %v2456_v31 }
  0xbb   : > { %1857 = vmatpush1.bf16.msra.mxu1 %v1675_v44  ;;  %365 = vmatprep.mubr.f32.mxu0 %v2200_v1 }
  0xbc   : > { %478 = vmatprep.mubr.f32.mxu1 %v2200_v1  ;;  %1678 = vmatprep.subr.bf16.mxu0 %v1677_v47 }
  0xbd   : > { %366 = vmatmul.mubr.f32.gmra.mrb[2].mxu0 %v2412_v50  ;;  %1850 = vmatprep.subr.bf16.mxu1 %v1677_v47 }
  0xbe   : > { %479 = vmatmul.mubr.f32.gmra.mrb[2].mxu1 %v2412_v50  ;;  %1680 = vmatpush1.bf16.msra.mxu0 %v1679_v51 }
  0xbf   : > { %1858 = vmatpush1.bf16.msra.mxu1 %v1679_v51  ;;  %371 = vmatprep.mubr.f32.mxu0 %v2200_v1 }
  0xc0   : > { %484 = vmatprep.mubr.f32.mxu1 %v2200_v1  ;;  %1682 = vmatprep.subr.bf16.mxu0 %v1681_v54 }
  0xc1   : > { %372 = vmatmul.mubr.f32.gmra.mrb[4].mxu0 %v2419_v57  ;;  %1851 = vmatprep.subr.bf16.mxu1 %v1681_v54 }
  0xc2   : > { %485 = vmatmul.mubr.f32.gmra.mrb[4].mxu1 %v2419_v57  ;;  %1684 = vmatpush1.bf16.msra.mxu0 %v1683_v58 }
  0xc3   : > { %1859 = vmatpush1.bf16.msra.mxu1 %v1683_v58  ;;  %377 = vmatprep.mubr.f32.mxu0 %v2200_v1 }
  0xc4   : > { %490 = vmatprep.mubr.f32.mxu1 %v2200_v1  ;;  %1686 = vmatprep.subr.bf16.mxu0 %v1685_v61 }
  0xc5   : > { %378 = vmatmul.mubr.f32.gmra.mrb[6].mxu0 %v2426_v2  ;;  %1852 = vmatprep.subr.bf16.mxu1 %v1685_v61 }
  0xc6   : > { %491 = vmatmul.mubr.f32.gmra.mrb[6].mxu1 %v2426_v2  ;;  %1688 = vmatpush1.bf16.msra.mxu0 %v1687_v3 }
  0xc7   : > { %1860 = vmatpush1.bf16.msra.mxu1 %v1687_v3  ;;  %383 = vmatprep.mubr.f32.mxu0 %v2200_v1 }
  0xc8   : > { %496 = vmatprep.mubr.f32.mxu1 %v2200_v1  ;;  %1690 = vmatprep.subr.bf16.mxu0 %v1689_v6 }
  0xc9   : > { %384 = vmatmul.mubr.f32.gmra.mrb[8].mxu0 %v163_v9  ;;  %1853 = vmatprep.subr.bf16.mxu1 %v1689_v6 }
  0xca   : > { %497 = vmatmul.mubr.f32.gmra.mrb[8].mxu1 %v163_v9  ;;  %1692 = vmatpush1.bf16.msra.mxu0 %v1691_v10 }
  0xcb   : > { %1861 = vmatpush1.bf16.msra.mxu1 %v1691_v10  ;;  %389 = vmatprep.mubr.f32.mxu0 %v2200_v1 }
  0xcc   : > { %502 = vmatprep.mubr.f32.mxu1 %v2200_v1  ;;  %1694 = vmatprep.subr.bf16.mxu0 %v1693_v13 }
  0xcd   : > { %390 = vmatmul.mubr.f32.gmra.mrb[10].mxu0 %v164_v16  ;;  %1854 = vmatprep.subr.bf16.mxu1 %v1693_v13 }
  0xce   : > { %503 = vmatmul.mubr.f32.gmra.mrb[10].mxu1 %v164_v16  ;;  %1696 = vmatpush1.bf16.msra.mxu0 %v1695_v17 }
  0xcf   : > { %1862 = vmatpush1.bf16.msra.mxu1 %v1695_v17  ;;  %395 = vmatprep.mubr.f32.mxu0 %v2200_v1 }
  0xd0   : > { %508 = vmatprep.mubr.f32.mxu1 %v2200_v1  ;;  %1698 = vmatprep.subr.bf16.mxu0 %v1697_v20 }
  0xd1   : > { %396 = vmatmul.mubr.f32.gmra.mrb[12].mxu0 %v165_v23  ;;  %1855 = vmatprep.subr.bf16.mxu1 %v1697_v20 }
  0xd2   : > { %509 = vmatmul.mubr.f32.gmra.mrb[12].mxu1 %v165_v23  ;;  %1700 = vmatpush1.bf16.msra.mxu0 %v1699_v24 }
  0xd3   : > { %1863 = vmatpush1.bf16.msra.mxu1 %v1699_v24  ;;  %401 = vmatprep.mubr.f32.mxu0 %v2200_v1 }
  0xd4   : > { %514 = vmatprep.mubr.f32.mxu1 %v2200_v1  ;;  %1702 = vmatprep.subr.bf16.mxu0 %v1701_v27 }
  0xd5   : > { %402 = vmatmul.mubr.f32.gmra.mrb[14].mxu0 %v166_v28  ;;  %1856 = vmatprep.subr.bf16.mxu1 %v1701_v27 }
  0xd6   : > { %515 = vmatmul.mubr.f32.gmra.mrb[14].mxu1 %v166_v28  ;;  %1704 = vmatpush1.bf16.msra.mxu0 %v1703_v29 }
  0xd7   : > { %1864 = vmatpush1.bf16.msra.mxu1 %v1703_v29  ;;  %585 = vmatprep.mubr.f32.mxu0 %v2200_v1 }
  0xd8   : > { %609 = vmatprep.mubr.f32.mxu1 %v2200_v1 }
  0xd9   : > { %586 = vmatmul.mubr.f32.vlgmr.msra.gmra.mrb[16].mxu0 %v2407_v43 }
  0xda   : > { %610 = vmatmul.mubr.f32.vlgmr.msra.gmra.mrb[16].mxu1 %v163_v9  ;;  %591 = vmatprep.mubr.f32.mxu0 %v2200_v1 }
  0xdb   : > { %615 = vmatprep.mubr.f32.mxu1 %v2200_v1 }
  0xdd   : > { %592 = vmatmul.mubr.f32.gmra.mrb[18].mxu0 %v2412_v50 }
  0xde   : > { %616 = vmatmul.mubr.f32.gmra.mrb[18].mxu1 %v164_v16  ;;  %597 = vmatprep.mubr.f32.mxu0 %v2200_v1 }
  0xdf   : > { %621 = vmatprep.mubr.f32.mxu1 %v2200_v1 }
  0xe1   : > { %598 = vmatmul.mubr.f32.gmra.mrb[20].mxu0 %v2419_v57 }
  0xe2   : > { %622 = vmatmul.mubr.f32.gmra.mrb[20].mxu1 %v165_v23  ;;  %603 = vmatprep.mubr.f32.mxu0 %v2200_v1 }
  0xe3   : > { %627 = vmatprep.mubr.f32.mxu1 %v2200_v1  ;;  %v2469_v1 = vrot.slane %v2462_v33, %v267_v32 }
  0xe5   : > { %604 = vmatmul.mubr.f32.gmra.mrb[22].mxu0 %v2426_v2 }
  0xe6   : > { %628 = vmatmul.mubr.f32.gmra.mrb[22].mxu1 %v166_v28 }
 0x18c   : > { %v361_v40 = vpop.f32.mrb[0].mxu0 }
 0x18d   : > { %v362_v41 = vadd.f32 %v361_v40, %v2469_v1  ;;  %v474_v42 = vpop.f32.mrb[0].mxu1  ;;  %v363_v43 = vpop.f32.mrb[1].mxu0 }
 0x18e   : > { %v475_v44 = vadd.f32 %v474_v42, %v2472_v37  ;;  %v364_v45 = vadd.f32 %v363_v43, %v2475_v38  ;;  %v476_v46 = vpop.f32.mrb[1].mxu1 }
 0x18f   : > { %638 = vst [vmem:[%s2483_s27] sm:$0xff] %v362_v41  ;;  %v477_v47 = vadd.f32 %v476_v46, %v2478_v39 }
 0x190   : > { %640 = vst [vmem:[%s2483_s27 + $0x10] sm:$0xff] %v475_v44  ;;  %639 = vst [vmem:[%s2483_s27 + $0x8] sm:$0xff] %v364_v45  ;;  %v367_v48 = vpop.f32.mrb[2].mxu0  ;;  %v284_v45 = vrot.slane %v2462_v33, %v283_v30 }
 0x191   : > { %641 = vst [vmem:[%s2483_s27 + $0x18] sm:$0xff] %v477_v47  ;;  %v368_v49 = vadd.f32 %v367_v48, %v2469_v1  ;;  %v480_v50 = vpop.f32.mrb[2].mxu1  ;;  %v369_v51 = vpop.f32.mrb[3].mxu0  ;;  %v288_v48 = vrot.slane %v2462_v33, %v287_v36 }
 0x192   : > { %v481_v52 = vadd.f32 %v480_v50, %v2472_v37  ;;  %v370_v53 = vadd.f32 %v369_v51, %v2475_v38  ;;  %v482_v54 = vpop.f32.mrb[3].mxu1 }
 0x193   : > { %1400 = vst [vmem:[%s2483_s27 + $0x30] sm:$0xff] %v368_v49  ;;  %v483_v55 = vadd.f32 %v482_v54, %v2478_v39 }
 0x194   : > { %1402 = vst [vmem:[%s2483_s27 + $0x40] sm:$0xff] %v481_v52  ;;  %1401 = vst [vmem:[%s2483_s27 + $0x38] sm:$0xff] %v370_v53  ;;  %v373_v56 = vpop.f32.mrb[4].mxu0 }
 0x195   : > { %1403 = vst [vmem:[%s2483_s27 + $0x48] sm:$0xff] %v483_v55  ;;  %v374_v57 = vadd.f32 %v373_v56, %v2469_v1  ;;  %v486_v58 = vpop.f32.mrb[4].mxu1  ;;  %v375_v59 = vpop.f32.mrb[5].mxu0 }
 0x196   : > { %v487_v60 = vadd.f32 %v486_v58, %v2472_v37  ;;  %v376_v61 = vadd.f32 %v375_v59, %v2475_v38  ;;  %v488_v62 = vpop.f32.mrb[5].mxu1 }
 0x197   : > { %1408 = vst [vmem:[%s2483_s27 + $0x60] sm:$0xff] %v374_v57  ;;  %v489_v63 = vadd.f32 %v488_v62, %v2478_v39 }
 0x198   : > { %1410 = vst [vmem:[%s2483_s27 + $0x70] sm:$0xff] %v487_v60  ;;  %1409 = vst [vmem:[%s2483_s27 + $0x68] sm:$0xff] %v376_v61  ;;  %v379_v2 = vpop.f32.mrb[6].mxu0 }
 0x199   : > { %1411 = vst [vmem:[%s2483_s27 + $0x78] sm:$0xff] %v489_v63  ;;  %v380_v3 = vadd.f32 %v379_v2, %v2469_v1  ;;  %v492_v4 = vpop.f32.mrb[6].mxu1  ;;  %v381_v5 = vpop.f32.mrb[7].mxu0 }
 0x19a   : > { %v493_v6 = vadd.f32 %v492_v4, %v2472_v37  ;;  %v382_v7 = vadd.f32 %v381_v5, %v2475_v38  ;;  %v494_v8 = vpop.f32.mrb[7].mxu1 }
 0x19b   : > { %1416 = vst [vmem:[%s2483_s27 + $0x90] sm:$0xff] %v380_v3  ;;  %v495_v9 = vadd.f32 %v494_v8, %v2478_v39 }
 0x19c   : > { %1418 = vst [vmem:[%s2483_s27 + $0xa0] sm:$0xff] %v493_v6  ;;  %1417 = vst [vmem:[%s2483_s27 + $0x98] sm:$0xff] %v382_v7  ;;  %v385_v10 = vpop.f32.mrb[8].mxu0 }
 0x19d   : > { %1419 = vst [vmem:[%s2483_s27 + $0xa8] sm:$0xff] %v495_v9  ;;  %v386_v11 = vadd.f32 %v385_v10, %v2469_v1  ;;  %v498_v12 = vpop.f32.mrb[8].mxu1  ;;  %v387_v13 = vpop.f32.mrb[9].mxu0 }
 0x19e   : > { %v499_v14 = vadd.f32 %v498_v12, %v2472_v37  ;;  %v388_v15 = vadd.f32 %v387_v13, %v2475_v38  ;;  %v500_v16 = vpop.f32.mrb[9].mxu1 }
 0x19f   : > { %1424 = vst [vmem:[%s2483_s27 + $0xc0] sm:$0xff] %v386_v11  ;;  %v501_v17 = vadd.f32 %v500_v16, %v2478_v39 }
 0x1a0   : > { %1426 = vst [vmem:[%s2483_s27 + $0xd0] sm:$0xff] %v499_v14  ;;  %1425 = vst [vmem:[%s2483_s27 + $0xc8] sm:$0xff] %v388_v15  ;;  %v391_v18 = vpop.f32.mrb[10].mxu0 }
 0x1a1   : > { %1427 = vst [vmem:[%s2483_s27 + $0xd8] sm:$0xff] %v501_v17  ;;  %v392_v19 = vadd.f32 %v391_v18, %v2469_v1  ;;  %v504_v20 = vpop.f32.mrb[10].mxu1  ;;  %v393_v21 = vpop.f32.mrb[11].mxu0 }
 0x1a2   : > { %v505_v22 = vadd.f32 %v504_v20, %v2472_v37  ;;  %v394_v23 = vadd.f32 %v393_v21, %v2475_v38  ;;  %v506_v24 = vpop.f32.mrb[11].mxu1 }
 0x1a3   : > { %1432 = vst [vmem:[%s2483_s27 + $0xf0] sm:$0xff] %v392_v19  ;;  %v507_v25 = vadd.f32 %v506_v24, %v2478_v39 }
 0x1a4   : > { %1434 = vst [vmem:[%s2483_s27 + $0x100] sm:$0xff] %v505_v22  ;;  %1433 = vst [vmem:[%s2483_s27 + $0xf8] sm:$0xff] %v394_v23  ;;  %v397_v26 = vpop.f32.mrb[12].mxu0 }
 0x1a5   : > { %1435 = vst [vmem:[%s2483_s27 + $0x108] sm:$0xff] %v507_v25  ;;  %v398_v27 = vadd.f32 %v397_v26, %v2469_v1  ;;  %v510_v28 = vpop.f32.mrb[12].mxu1  ;;  %v399_v29 = vpop.f32.mrb[13].mxu0 }
 0x1a6   : > { %v511_v32 = vadd.f32 %v510_v28, %v2472_v37  ;;  %v400_v34 = vadd.f32 %v399_v29, %v2475_v38  ;;  %v512_v35 = vpop.f32.mrb[13].mxu1 }
 0x1a7   : > { %1440 = vst [vmem:[%s2483_s27 + $0x120] sm:$0xff] %v398_v27  ;;  %v513_v40 = vadd.f32 %v512_v35, %v2478_v39 }
 0x1a8   : > { %1442 = vst [vmem:[%s2483_s27 + $0x130] sm:$0xff] %v511_v32  ;;  %1441 = vst [vmem:[%s2483_s27 + $0x128] sm:$0xff] %v400_v34  ;;  %v403_v41 = vpop.f32.mrb[14].mxu0 }
 0x1a9   : > { %1443 = vst [vmem:[%s2483_s27 + $0x138] sm:$0xff] %v513_v40  ;;  %v404_v42 = vadd.f32 %v403_v41, %v2469_v1  ;;  %v516_v43 = vpop.f32.mrb[14].mxu1  ;;  %v405_v44 = vpop.f32.mrb[15].mxu0 }
 0x1aa   : > { %v517_v46 = vadd.f32 %v516_v43, %v2472_v37  ;;  %v406_v31 = vadd.f32 %v405_v44, %v2475_v38  ;;  %v518_v47 = vpop.f32.mrb[15].mxu1 }
 0x1ab   : > { %1448 = vst [vmem:[%s2483_s27 + $0x150] sm:$0xff] %v404_v42  ;;  %v519_v49 = vadd.f32 %v518_v47, %v2478_v39 }
 0x1ac   : > { %1450 = vst [vmem:[%s2483_s27 + $0x160] sm:$0xff] %v517_v46  ;;  %1449 = vst [vmem:[%s2483_s27 + $0x158] sm:$0xff] %v406_v31  ;;  %v587_v1 = vpop.f32.mrb[16].mxu0 }
 0x1ad   : > { %1451 = vst [vmem:[%s2483_s27 + $0x168] sm:$0xff] %v519_v49  ;;  %v588_v50 = vadd.f32 %v587_v1, %v284_v45  ;;  %v611_v51 = vpop.f32.mrb[16].mxu1  ;;  %v589_v52 = vpop.f32.mrb[17].mxu0 }
 0x1ae   : > { %v612_v37 = vadd.f32 %v611_v51, %v284_v45  ;;  %v590_v53 = vadd.f32 %v589_v52, %v288_v48  ;;  %v613_v38 = vpop.f32.mrb[17].mxu1 }
 0x1af   : > { %642 = vst [vmem:[%s2483_s27 + $0x20] sm:$0xff] %v588_v50  ;;  %v614_v33 = vadd.f32 %v613_v38, %v288_v48 }
 0x1b0   : > { %1428 = vst [vmem:[%s2483_s27 + $0xe0] sm:$0xff] %v612_v37  ;;  %643 = vst [vmem:[%s2483_s27 + $0x28] sm:$0xff] %v590_v53  ;;  %v593_v39 = vpop.f32.mrb[18].mxu0 }
 0x1b1   : > { %1429 = vst [vmem:[%s2483_s27 + $0xe8] sm:$0xff] %v614_v33  ;;  %v594_v54 = vadd.f32 %v593_v39, %v284_v45  ;;  %v617_v55 = vpop.f32.mrb[18].mxu1  ;;  %v595_v56 = vpop.f32.mrb[19].mxu0 }
 0x1b2   : > { %v618_v57 = vadd.f32 %v617_v55, %v284_v45  ;;  %v596_v58 = vadd.f32 %v595_v56, %v288_v48  ;;  %v619_v59 = vpop.f32.mrb[19].mxu1 }
 0x1b3   : > { %1404 = vst [vmem:[%s2483_s27 + $0x50] sm:$0xff] %v594_v54  ;;  %v620_v60 = vadd.f32 %v619_v59, %v288_v48 }
 0x1b4   : > { %1436 = vst [vmem:[%s2483_s27 + $0x110] sm:$0xff] %v618_v57  ;;  %1405 = vst [vmem:[%s2483_s27 + $0x58] sm:$0xff] %v596_v58  ;;  %v599_v61 = vpop.f32.mrb[20].mxu0 }
 0x1b5   : > { %1437 = vst [vmem:[%s2483_s27 + $0x118] sm:$0xff] %v620_v60  ;;  %v600_v62 = vadd.f32 %v599_v61, %v284_v45  ;;  %v623_v63 = vpop.f32.mrb[20].mxu1  ;;  %v601_v2 = vpop.f32.mrb[21].mxu0 }
 0x1b6   : > { %v624_v3 = vadd.f32 %v623_v63, %v284_v45  ;;  %v602_v4 = vadd.f32 %v601_v2, %v288_v48  ;;  %v625_v5 = vpop.f32.mrb[21].mxu1 }
 0x1b7   : > { %1412 = vst [vmem:[%s2483_s27 + $0x80] sm:$0xff] %v600_v62  ;;  %v626_v6 = vadd.f32 %v625_v5, %v288_v48  ;;  %128 = sbr.rel (!%p2688_p4) target bundleno = 122 (0x7a), region = 126 }
 0x1b8   : > { %1444 = vst [vmem:[%s2483_s27 + $0x140] sm:$0xff] %v624_v3  ;;  %1413 = vst [vmem:[%s2483_s27 + $0x88] sm:$0xff] %v602_v4  ;;  %v605_v7 = vpop.f32.mrb[22].mxu0 }
 0x1b9   : > { %1445 = vst [vmem:[%s2483_s27 + $0x148] sm:$0xff] %v626_v6  ;;  %v606_v8 = vadd.f32 %v605_v7, %v284_v45  ;;  %v629_v9 = vpop.f32.mrb[22].mxu1  ;;  %v607_v10 = vpop.f32.mrb[23].mxu0 }
 0x1ba   : > { %v630_v11 = vadd.f32 %v629_v9, %v284_v45  ;;  %v608_v12 = vadd.f32 %v607_v10, %v288_v48  ;;  %v631_v13 = vpop.f32.mrb[23].mxu1 }
 0x1bb   : > { %1420 = vst [vmem:[%s2483_s27 + $0xb0] sm:$0xff] %v606_v8  ;;  %v632_v14 = vadd.f32 %v631_v13, %v288_v48 }
 0x1bc   : > { %1452 = vst [vmem:[%s2483_s27 + $0x170] sm:$0xff] %v630_v11  ;;  %1421 = vst [vmem:[%s2483_s27 + $0xb8] sm:$0xff] %v608_v12 }
 0x1bd   : > { %1453 = vst [vmem:[%s2483_s27 + $0x178] sm:$0xff] %v632_v14  ;;  %s2687_s27 = smov %s2372_s0 }
 0x1be PF:  { %p1454_p5 = scmp.le.s32.totalorder %s2323_s15, 0  ;;  %v2573_v15 = vmov 0.0   ;;  %v2575_v16 = vmov 0.0  }
 0x1bf   :  { %v2577_v17 = vmov (!%p1454_p5), 0.0   ;;  %v2579_v18 = vmov (!%p1454_p5), 0.0   ;;  %s2581_s7 = smov (!%p1454_p5), 0  }
 0x1c0   :  { %1381 = sbr.rel (%p1454_p5) target bundleno = 783 (0x30f), region = 131 }
 0x1c7 LB: > { %v729_v19 = vld [vmem:[#allocation10 + $0x8] sm:$0xff]  ;;  %v732_v20 = vld [vmem:[#allocation10 + $0x20] sm:$0xff]  ;;  %v731_v23 = vld [vmem:[#allocation10 + $0x18] sm:$0xff]  ;;  %v2201_v26 = vmov 0.0|0.0   ;;  %v2202_v27 = vmov 0.0   ;;  %s1459_s2 = sadd.s32 4294967295, %s2323_s15  ;;  %v946_v36 = vstv %s2178_s7  ;;  %s2178_s7 = sphi %s2581_s7, %s717_s7   ;;  %v2174_v18 = vphi %v2579_v18, %v2690_v18   ;;  %v2170_v17 = vphi %v2577_v17, %v2689_v17  }
 0x1c8   : > { %v728_v21 = vld [vmem:[#allocation10] sm:$0xff]  ;;  %v1705_v22 = vpack.c.bf16 %v732_v20, %v729_v19  ;;  %v735_v24 = vld [vmem:[#allocation10 + $0x38] sm:$0xff]  ;;  %v738_v25 = vld [vmem:[#allocation10 + $0x50] sm:$0xff]  ;;  %1737 = vmatprep.subr.bf16.mxu1 %v2201_v26  ;;  %840 = vmatprep.mubr.f32.mxu0 %v2202_v27  ;;  %vm2203_vm0 = vmmov 0   ;;  %v2204_v35 = vmov 0   ;;  %s2599_s4 = ssub.s32 %s1459_s2, %s2178_s7  ;;  %vm947_vm1 = vcmp.gt.s32.totalorder %v2330_v0, %v946_v36  ;;  %s1468_s16 = smul.u32 48, %s2178_s7 }
 0x1c9   : > { %v1707_v28 = vpack.c.bf16 %v731_v23, %v728_v21  ;;  %v1709_v29 = vpack.c.bf16 %v738_v25, %v735_v24  ;;  %v734_v30 = vld [vmem:[#allocation10 + $0x30] sm:$0xff]  ;;  %v737_v32 = vld [vmem:[#allocation10 + $0x48] sm:$0xff]  ;;  %1571 = vmatprep.mubr.msk.f32.mxu1 %vm2203_vm0, %v2202_v27  ;;  %1934 = vset.pattern.permute.xlu0 %v2204_v35  ;;  %v744_v40 = vld [vmem:[#allocation10 + $0x80] sm:$0xff]  ;;  %v1180_v41 = vstv %s2599_s4  ;;  %v948_v43 = vsel %vm947_vm1, 1, %v2204_v35  ;;  %s1469_s0 = smul.u32 48, %s2599_s4  ;;  %s717_s7 = sadd.s32 1, %s2178_s7  }
 0x1ca   : > { %v741_v34 = vld [vmem:[#allocation10 + $0x68] sm:$0xff]  ;;  %1706 = vmatprep.subr.bf16.mxu0 %v1705_v22  ;;  %v1711_v42 = vpack.c.bf16 %v737_v32, %v734_v30  ;;  %vm1181_vm2 = vcmp.gt.s32.totalorder %v2330_v0, %v1180_v41  ;;  %v740_v45 = vld [vmem:[#allocation10 + $0x60] sm:$0xff]  ;;  %v743_v46 = vld [vmem:[#allocation10 + $0x78] sm:$0xff]  ;;  %950 = vperm.xlu0 %1934, %v948_v43   ;;  %s724_s14 = scalar_lea.vmem [#allocation2], %s1468_s16  ;;  %p716_p8 = scmp.ge.s32.totalorder %s717_s7, %s2323_s15 }
 0x1cb   : > { %1708 = vmatpush1.bf16.msra.mxu0 %v1707_v28  ;;  %v1713_v44 = vpack.c.bf16 %v744_v40, %v741_v34  ;;  %v747_v31 = vld [vmem:[#allocation10 + $0x98] sm:$0xff]  ;;  %v750_v47 = vld [vmem:[#allocation10 + $0xb0] sm:$0xff]  ;;  %v1182_v48 = vsel %vm1181_vm2, 1, %v2204_v35  ;;  %v1715_v49 = vpack.c.bf16 %v743_v46, %v740_v45  ;;  %v749_v51 = vld [vmem:[#allocation10 + $0xa8] sm:$0xff]  ;;  %s2631_s30 = scalar_lea.vmem [#allocation2], %s1469_s0 }
 0x1cc   : > { %1710 = vmatprep.subr.bf16.mxu0 %v1709_v29  ;;  %v746_v1 = vld [vmem:[#allocation10 + $0x90] sm:$0xff]  ;;  %v1717_v50 = vpack.c.bf16 %v750_v47, %v747_v31  ;;  %v733_v37 = vld [vmem:[#allocation10 + $0x28] sm:$0xff]  ;;  %v756_v38 = vld [vmem:[#allocation10 + $0xe0] sm:$0xff] }
 0x1cd   : > { %v730_v52 = vld [vmem:[#allocation10 + $0x10] sm:$0xff]  ;;  %v753_v53 = vld [vmem:[#allocation10 + $0xc8] sm:$0xff]  ;;  %v736_v39 = vld [vmem:[#allocation10 + $0x40] sm:$0xff]  ;;  %v1719_v55 = vpack.c.bf16 %v749_v51, %v746_v1 }
 0x1ce   : > { %1184 = vperm.xlu0 %1934, %v1182_v48   ;;  %v1738_v33 = vpack.c.bf16 %v733_v37, %v730_v52  ;;  %v739_v54 = vld [vmem:[#allocation10 + $0x58] sm:$0xff]  ;;  %v752_v56 = vld [vmem:[#allocation10 + $0xc0] sm:$0xff]  ;;  %v1721_v58 = vpack.c.bf16 %v756_v38, %v753_v53  ;;  %v742_v60 = vld [vmem:[#allocation10 + $0x70] sm:$0xff] }
 0x1cf   : > { %1712 = vmatpush1.bf16.msra.mxu0 %v1711_v42  ;;  %v1741_v57 = vpack.c.bf16 %v739_v54, %v736_v39  ;;  %v755_v59 = vld [vmem:[#allocation10 + $0xd8] sm:$0xff]  ;;  %v745_v61 = vld [vmem:[#allocation10 + $0x88] sm:$0xff]  ;;  %v762_v63 = vld [vmem:[#allocation10 + $0x110] sm:$0xff] }
 0x1d0   : > { %1714 = vmatprep.subr.bf16.mxu0 %v1713_v44  ;;  %1739 = vmatpush3.bf16.msra.mxu1 %v1738_v33  ;;  %v759_v62 = vld [vmem:[#allocation10 + $0xf8] sm:$0xff]  ;;  %v1723_v2 = vpack.c.bf16 %v755_v59, %v752_v56  ;;  %v758_v3 = vld [vmem:[#allocation10 + $0xf0] sm:$0xff]  ;;  %v1744_v4 = vpack.c.bf16 %v745_v61, %v742_v60  ;;  %v761_v6 = vld [vmem:[#allocation10 + $0x108] sm:$0xff] }
 0x1d1   : > { %1740 = vmatprep.subr.bf16.mxu1 %v2201_v26  ;;  %v1725_v5 = vpack.c.bf16 %v762_v63, %v759_v62  ;;  %v748_v7 = vld [vmem:[#allocation10 + $0xa0] sm:$0xff]  ;;  %v751_v8 = vld [vmem:[#allocation10 + $0xb8] sm:$0xff]  ;;  %v765_v9 = vld [vmem:[#allocation10 + $0x128] sm:$0xff]  ;;  %v1727_v11 = vpack.c.bf16 %v761_v6, %v758_v3 }
 0x1d2   : > { %v768_v10 = vld [vmem:[#allocation10 + $0x140] sm:$0xff]  ;;  %v1747_v13 = vpack.c.bf16 %v751_v8, %v748_v7  ;;  %v767_v15 = vld [vmem:[#allocation10 + $0x138] sm:$0xff]  ;;  %v754_v16 = vld [vmem:[#allocation10 + $0xd0] sm:$0xff] }
 0x1d3   : > { %1716 = vmatpush1.bf16.msra.mxu0 %v1715_v49  ;;  %v764_v12 = vld [vmem:[#allocation10 + $0x120] sm:$0xff]  ;;  %v1729_v14 = vpack.c.bf16 %v768_v10, %v765_v9  ;;  %v757_v19 = vld [vmem:[#allocation10 + $0xe8] sm:$0xff]  ;;  %v771_v20 = vld [vmem:[#allocation10 + $0x158] sm:$0xff] }
 0x1d4   : > { %1718 = vmatprep.subr.bf16.mxu0 %v1717_v50  ;;  %1742 = vmatpush3.bf16.msra.mxu1 %v1741_v57  ;;  %v774_v21 = vld [vmem:[#allocation10 + $0x170] sm:$0xff]  ;;  %v1731_v22 = vpack.c.bf16 %v767_v15, %v764_v12  ;;  %v1750_v24 = vpack.c.bf16 %v757_v19, %v754_v16  ;;  %v773_v28 = vld [vmem:[#allocation10 + $0x168] sm:$0xff]  ;;  %v760_v29 = vld [vmem:[#allocation10 + $0x100] sm:$0xff] }
 0x1d5   : > { %1743 = vmatprep.subr.bf16.mxu1 %v2201_v26  ;;  %v770_v23 = vld [vmem:[#allocation10 + $0x150] sm:$0xff]  ;;  %v1733_v25 = vpack.c.bf16 %v774_v21, %v771_v20  ;;  %v763_v30 = vld [vmem:[#allocation10 + $0x118] sm:$0xff]  ;;  %v963_v32 = vld [vmem:[#allocation12 + $0x8] sm:$0xff] }
 0x1d6   : > { %v966_v34 = vld [vmem:[#allocation12 + $0x20] sm:$0xff]  ;;  %v1735_v35 = vpack.c.bf16 %v773_v28, %v770_v23  ;;  %v1753_v40 = vpack.c.bf16 %v763_v30, %v760_v29  ;;  %v965_v42 = vld [vmem:[#allocation12 + $0x18] sm:$0xff]  ;;  %v766_v43 = vld [vmem:[#allocation10 + $0x130] sm:$0xff] }
 0x1d7   : > { %1720 = vmatpush1.bf16.msra.mxu0 %v1719_v55  ;;  %v962_v36 = vld [vmem:[#allocation12] sm:$0xff]  ;;  %v1761_v41 = vpack.c.bf16 %v966_v34, %v963_v32  ;;  %v769_v44 = vld [vmem:[#allocation10 + $0x148] sm:$0xff]  ;;  %v969_v45 = vld [vmem:[#allocation12 + $0x38] sm:$0xff] }
 0x1d8   : > { %1722 = vmatprep.subr.bf16.mxu0 %v1721_v58  ;;  %1745 = vmatpush3.bf16.msra.mxu1 %v1744_v4  ;;  %v972_v46 = vld [vmem:[#allocation12 + $0x50] sm:$0xff]  ;;  %v1763_v31 = vpack.c.bf16 %v965_v42, %v962_v36  ;;  %v1756_v48 = vpack.c.bf16 %v769_v44, %v766_v43  ;;  %v971_v1 = vld [vmem:[#allocation12 + $0x48] sm:$0xff]  ;;  %v772_v50 = vld [vmem:[#allocation10 + $0x160] sm:$0xff] }
 0x1d9   : > { %1746 = vmatprep.subr.bf16.mxu1 %v2201_v26  ;;  %v968_v47 = vld [vmem:[#allocation12 + $0x30] sm:$0xff]  ;;  %v1765_v49 = vpack.c.bf16 %v972_v46, %v969_v45  ;;  %v775_v51 = vld [vmem:[#allocation10 + $0x178] sm:$0xff]  ;;  %v975_v52 = vld [vmem:[#allocation12 + $0x68] sm:$0xff] }
 0x1da   : > { %v978_v37 = vld [vmem:[#allocation12 + $0x80] sm:$0xff]  ;;  %v1767_v53 = vpack.c.bf16 %v971_v1, %v968_v47  ;;  %v1759_v33 = vpack.c.bf16 %v775_v51, %v772_v50  ;;  %v977_v54 = vld [vmem:[#allocation12 + $0x78] sm:$0xff]  ;;  %v964_v55 = vld [vmem:[#allocation12 + $0x10] sm:$0xff] }
 0x1db   : > { %1724 = vmatpush1.bf16.msra.mxu0 %v1723_v2  ;;  %v974_v38 = vld [vmem:[#allocation12 + $0x60] sm:$0xff]  ;;  %v1769_v39 = vpack.c.bf16 %v978_v37, %v975_v52  ;;  %v967_v56 = vld [vmem:[#allocation12 + $0x28] sm:$0xff]  ;;  %v981_v57 = vld [vmem:[#allocation12 + $0x98] sm:$0xff] }
 0x1dc   : > { %1726 = vmatprep.subr.bf16.mxu0 %v1725_v5  ;;  %1748 = vmatpush3.bf16.msra.mxu1 %v1747_v13  ;;  %v984_v58 = vld [vmem:[#allocation12 + $0xb0] sm:$0xff]  ;;  %v1771_v59 = vpack.c.bf16 %v977_v54, %v974_v38  ;;  %v1794_v61 = vpack.c.bf16 %v967_v56, %v964_v55  ;;  %v983_v63 = vld [vmem:[#allocation12 + $0xa8] sm:$0xff]  ;;  %v970_v2 = vld [vmem:[#allocation12 + $0x40] sm:$0xff] }
 0x1dd   : > { %1749 = vmatprep.subr.bf16.mxu1 %v2201_v26  ;;  %v980_v60 = vld [vmem:[#allocation12 + $0x90] sm:$0xff]  ;;  %v1773_v62 = vpack.c.bf16 %v984_v58, %v981_v57  ;;  %v973_v3 = vld [vmem:[#allocation12 + $0x58] sm:$0xff]  ;;  %v987_v4 = vld [vmem:[#allocation12 + $0xc8] sm:$0xff] }
 0x1de   : > { %v990_v5 = vld [vmem:[#allocation12 + $0xe0] sm:$0xff]  ;;  %v1775_v6 = vpack.c.bf16 %v983_v63, %v980_v60  ;;  %v1797_v8 = vpack.c.bf16 %v973_v3, %v970_v2  ;;  %v989_v10 = vld [vmem:[#allocation12 + $0xd8] sm:$0xff]  ;;  %v979_v12 = vld [vmem:[#allocation12 + $0x88] sm:$0xff] }
 0x1df   : > { %1728 = vmatpush1.bf16.msra.mxu0 %v1727_v11  ;;  %v986_v7 = vld [vmem:[#allocation12 + $0xc0] sm:$0xff]  ;;  %v1777_v9 = vpack.c.bf16 %v990_v5, %v987_v4  ;;  %v976_v11 = vld [vmem:[#allocation12 + $0x70] sm:$0xff]  ;;  %v993_v13 = vld [vmem:[#allocation12 + $0xf8] sm:$0xff] }
 0x1e0   : > { %1730 = vmatprep.subr.bf16.mxu0 %v1729_v14  ;;  %1751 = vmatpush3.bf16.msra.mxu1 %v1750_v24  ;;  %v996_v14 = vld [vmem:[#allocation12 + $0x110] sm:$0xff]  ;;  %v1779_v15 = vpack.c.bf16 %v989_v10, %v986_v7  ;;  %v1800_v19 = vpack.c.bf16 %v979_v12, %v976_v11  ;;  %v995_v21 = vld [vmem:[#allocation12 + $0x108] sm:$0xff]  ;;  %v985_v23 = vld [vmem:[#allocation12 + $0xb8] sm:$0xff] }
 0x1e1   : > { %1752 = vmatprep.subr.bf16.mxu1 %v2201_v26  ;;  %v992_v16 = vld [vmem:[#allocation12 + $0xf0] sm:$0xff]  ;;  %v1781_v20 = vpack.c.bf16 %v996_v14, %v993_v13  ;;  %v999_v24 = vld [vmem:[#allocation12 + $0x128] sm:$0xff]  ;;  %v998_v29 = vld [vmem:[#allocation12 + $0x120] sm:$0xff] }
 0x1e2   : > { %v1783_v28 = vpack.c.bf16 %v995_v21, %v992_v16  ;;  %v1001_v32 = vld [vmem:[#allocation12 + $0x138] sm:$0xff]  ;;  %v988_v34 = vld [vmem:[#allocation12 + $0xd0] sm:$0xff]  ;;  %v1007_v45 = vld [vmem:[#allocation12 + $0x168] sm:$0xff] }
 0x1e3   : > { %1732 = vmatpush1.bf16.msra.mxu0 %v1731_v22  ;;  %v982_v22 = vld [vmem:[#allocation12 + $0xa0] sm:$0xff]  ;;  %v1005_v36 = vld [vmem:[#allocation12 + $0x158] sm:$0xff]  ;;  %v1004_v42 = vld [vmem:[#allocation12 + $0x150] sm:$0xff] }
 0x1e4   : > { %1734 = vmatprep.subr.bf16.mxu0 %v1733_v25  ;;  %1754 = vmatpush3.bf16.msra.mxu1 %v1753_v40  ;;  %v1002_v25 = vld [vmem:[#allocation12 + $0x140] sm:$0xff]  ;;  %v1803_v30 = vpack.c.bf16 %v985_v23, %v982_v22  ;;  %v1008_v40 = vld [vmem:[#allocation12 + $0x170] sm:$0xff]  ;;  %v1791_v47 = vpack.c.bf16 %v1007_v45, %v1004_v42  ;;  %v1003_v1 = vld [vmem:[#allocation12 + $0x148] sm:$0xff] }
 0x1e5   : > { %1755 = vmatprep.subr.bf16.mxu1 %v2201_v26  ;;  %v1789_v44 = vpack.c.bf16 %v1008_v40, %v1005_v36  ;;  %v994_v46 = vld [vmem:[#allocation12 + $0x100] sm:$0xff]  ;;  %v1009_v52 = vld [vmem:[#allocation12 + $0x178] sm:$0xff]  ;;  %v726_v38 = vld [vmem:[%s724_s14 + $0x8] sm:$0xff] }
 0x1e6   : > { %v1006_v51 = vld [vmem:[#allocation12 + $0x160] sm:$0xff]  ;;  %v727_v4 = vld [vmem:[%s724_s14 + $0x10] sm:$0xff]  ;;  %v961_v40 = vld [vmem:[%s2631_s30 + $0x28] sm:$0xff] }
 0x1e7   : > { %1736 = vmatpush1.bf16.msra.mxu0 %v1735_v35  ;;  %v991_v35 = vld [vmem:[#allocation12 + $0xe8] sm:$0xff]  ;;  %v1815_v37 = vpack.c.bf16 %v1009_v52, %v1006_v51  ;;  %v960_v10 = vld [vmem:[%s2631_s30 + $0x20] sm:$0xff] }
 0x1e8   : > { %1762 = vmatprep.subr.bf16.mxu0 %v1761_v41  ;;  %1757 = vmatpush3.bf16.msra.mxu1 %v1756_v48  ;;  %v1787_v41 = vpack.c.bf16 %v1001_v32, %v998_v29  ;;  %v1806_v43 = vpack.c.bf16 %v991_v35, %v988_v34  ;;  %v1463_v32 = vld [vmem:[%s2683_s8] ss:$0 sm:$0xff] }
 0x1e9   : > { %1758 = vmatprep.subr.bf16.mxu1 %v2201_v26 }
 0x1ea   : > { %841 = vmatmul.mubr.f32.vlgmr.msra.gmra.mrb[0].mxu0 %v2174_v18 }
 0x1eb   : > { %1764 = vmatpush1.bf16.msra.mxu0 %v1763_v31  ;;  %1074 = vmatprep.mubr.f32.mxu0 %v2202_v27  ;;  %v997_v31 = vld [vmem:[#allocation12 + $0x118] sm:$0xff] }
 0x1ec   : > { %1766 = vmatprep.subr.bf16.mxu0 %v1765_v49  ;;  %1760 = vmatpush3.bf16.msra.mxu1 %v1759_v33  ;;  %v1809_v48 = vpack.c.bf16 %v997_v31, %v994_v46  ;;  %v1000_v49 = vld [vmem:[#allocation12 + $0x130] sm:$0xff] }
 0x1ed   : > { %1793 = vmatprep.subr.bf16.mxu1 %v2201_v26  ;;  %v1812_v50 = vpack.c.bf16 %v1003_v1, %v1000_v49 }
 0x1ef   : > { %1768 = vmatpush1.bf16.msra.mxu0 %v1767_v53  ;;  %1572 = vmatmul.mubr.f32.vlgmr.msra.gmra.mrb[0].mxu1 %v2174_v18  ;;  %v725_v53 = vld [vmem:[%s724_s14] sm:$0xff] }
 0x1f0   : > { %1770 = vmatprep.subr.bf16.mxu0 %v1769_v39  ;;  %1795 = vmatpush3.bf16.msra.mxu1 %v1794_v61 }
 0x1f1   : > { %1796 = vmatprep.subr.bf16.mxu1 %v2201_v26  ;;  %1606 = vmatprep.mubr.msk.f32.mxu1 %vm2203_vm0, %v2202_v27  ;;  %v1785_v27 = vpack.c.bf16 %v1002_v25, %v999_v24 }
 0x1f3   : > { %1772 = vmatpush1.bf16.msra.mxu0 %v1771_v59 }
 0x1f4   : > { %1774 = vmatprep.subr.bf16.mxu0 %v1773_v62  ;;  %1798 = vmatpush3.bf16.msra.mxu1 %v1797_v8  ;;  %v1458_v62 = vld [vmem:[%s2681_s6] ss:$0 sm:$0xff] }
 0x1f5   : > { %1799 = vmatprep.subr.bf16.mxu1 %v2201_v26 }
 0x1f7   : > { %1776 = vmatpush1.bf16.msra.mxu0 %v1775_v6  ;;  %v959_v6 = vld [vmem:[%s2631_s30 + $0x18] sm:$0xff] }
 0x1f8   : > { %1778 = vmatprep.subr.bf16.mxu0 %v1777_v9  ;;  %1801 = vmatpush3.bf16.msra.mxu1 %v1800_v19 }
 0x1f9   : > { %1802 = vmatprep.subr.bf16.mxu1 %v2201_v26 }
 0x1fb   : > { %1780 = vmatpush1.bf16.msra.mxu0 %v1779_v15 }
 0x1fc   : > { %1782 = vmatprep.subr.bf16.mxu0 %v1781_v20  ;;  %1804 = vmatpush3.bf16.msra.mxu1 %v1803_v30 }
 0x1fd   : > { %1805 = vmatprep.subr.bf16.mxu1 %v2201_v26 }
 0x1ff   : > { %1784 = vmatpush1.bf16.msra.mxu0 %v1783_v28 }
 0x200   : > { %1786 = vmatprep.subr.bf16.mxu0 %v1785_v27  ;;  %1807 = vmatpush3.bf16.msra.mxu1 %v1806_v43 }
 0x201   : > { %1808 = vmatprep.subr.bf16.mxu1 %v2201_v26 }
 0x203   : > { %1788 = vmatpush1.bf16.msra.mxu0 %v1787_v41 }
 0x204   : > { %1790 = vmatprep.subr.bf16.mxu0 %v1789_v44  ;;  %1810 = vmatpush3.bf16.msra.mxu1 %v1809_v48 }
 0x205   : > { %1811 = vmatprep.subr.bf16.mxu1 %v2201_v26 }
 0x207   : > { %1792 = vmatpush1.bf16.msra.mxu0 %v1791_v47 }
 0x208   : > { %1813 = vmatpush3.bf16.msra.mxu1 %v1812_v50 }
 0x209   : > { %1814 = vmatprep.subr.bf16.mxu1 %v2201_v26 }
 0x20a   : > { %1075 = vmatmul.mubr.f32.vlgmr.msra.gmra.mrb[2].mxu0 %v2170_v17 }
 0x20c   : > { %1816 = vmatpush3.bf16.msra.mxu1 %v1815_v37 }
 0x20f   : > { %1607 = vmatmul.mubr.f32.vlgmr.msra.gmra.mrb[2].mxu1 %v2170_v17 }
 0x249   : > { %v951_v20 = vpop.permute.xlu0 %950 }
 0x24a   : > { %vm952_vm3 = vcmp.eq.s32.totalorder %v951_v20, 1 }
 0x24d   : > { %v1185_v46 = vpop.permute.xlu0 %1184 }
 0x24e   : > { %vm1186_vm4 = vcmp.eq.s32.totalorder %v1185_v46, 1 }
 0x2bd   : > { %v842_v33 = vpop.f32.mrb[0].mxu0 }
 0x2be   : > { %v917_v39 = vadd.f32 %v842_v33, %v725_v53  ;;  %v844_v54 = vpop.f32.mrb[1].mxu0 }
 0x2bf   : > { %v924_v55 = vadd.f32 %v844_v54, %v726_v38 }
 0x2c0   : > { %v1456_v56 = vmul.f32 -1.442695, %v917_v39 }
 0x2c1   : > { %v1457_v57 = vmul.f32 -1.442695, %v924_v55 }
 0x2c2   : > { %1935 = vpow2.f32 %v1456_v56  ;;  %v913_v58 = vpop.f32.mrb[0].mxu1 }
 0x2c3   : > { %v1573_v59 = vpop.f32.mrb[1].mxu1  ;;  %1937 = vpow2.f32 %v1457_v57  ;;  %v938_v2 = vadd.f32 %v1458_v62, %v913_v58 }
 0x2cc   : > { %v1936_v60 = vpop.eup %1935 }
 0x2cd   : > { %v921_v26 = vadd.f32 1.0, %v1936_v60  ;;  %v1938_v61 = vpop.eup %1937 }
 0x2ce   : > { %v928_v63 = vadd.f32 1.0, %v1938_v61 }
 0x2cf   : > { %1939 = vrcp.f32 %v921_v26 }
 0x2d0   : > { %1941 = vrcp.f32 %v928_v63 }
 0x2d9   : > { %v1940_v3 = vpop.eup %1939 }
 0x2da   : > { %v939_v5 = vmul.f32 %v1940_v3, %v938_v2  ;;  %v1942_v14 = vpop.eup %1941 }
 0x2db   : > { %v942_v21 = vsub.f32 1.0, %v1942_v14  ;;  %v944_v24 = vmul.f32 %v2174_v18, %v1942_v14 }
 0x2dc   : > { %v940_v7 = vadd.f32 %v939_v5, %v727_v4 }
 0x2dd   : > { %v1076_v8 = vpop.f32.mrb[2].mxu0 }
 0x2de   : > { %1943 = vtanh.f32 %v940_v7  ;;  %v1151_v9 = vadd.f32 %v1076_v8, %v959_v6  ;;  %v1078_v11 = vpop.f32.mrb[3].mxu0 }
 0x2df   : > { %v1158_v13 = vadd.f32 %v1078_v11, %v960_v10 }
 0x2e0   : > { %v1461_v12 = vmul.f32 -1.442695, %v1151_v9 }
 0x2e1   : > { %v1462_v15 = vmul.f32 -1.442695, %v1158_v13 }
 0x2e2   : > { %1945 = vpow2.f32 %v1461_v12  ;;  %v1147_v16 = vpop.f32.mrb[2].mxu1 }
 0x2e3   : > { %v1608_v19 = vpop.f32.mrb[3].mxu1  ;;  %1947 = vpow2.f32 %v1462_v15  ;;  %v1172_v35 = vadd.f32 %v1463_v32, %v1147_v16 }
 0x2e8   : > { %v1944_v22 = vpop.eup %1943 }
 0x2e9   : > { %v943_v23 = vmul.f32 %v1944_v22, %v942_v21 }
 0x2eb   : > { %v945_v25 = vadd.f32 %v944_v24, %v943_v23 }
 0x2ec   : > { %v1946_v28 = vpop.eup %1945 }
 0x2ed   : > { %v1155_v29 = vadd.f32 1.0, %v1946_v28  ;;  %v953_v30 = vsel %vm952_vm3, %v945_v25, %v2174_v18   ;;  %v1948_v27 = vpop.eup %1947 }
 0x2ee   : > { %v1162_v34 = vadd.f32 1.0, %v1948_v27  ;;  %v2692_v16 = vmov (%p716_p8), %v953_v30 }
 0x2ef   : > { %1949 = vrcp.f32 %v1155_v29 }
 0x2f0   : > { %1951 = vrcp.f32 %v1162_v34 }
 0x2f9   : > { %v1950_v36 = vpop.eup %1949 }
 0x2fa   : > { %v1173_v41 = vmul.f32 %v1950_v36, %v1172_v35  ;;  %v1952_v43 = vpop.eup %1951 }
 0x2fb   : > { %v1176_v44 = vsub.f32 1.0, %v1952_v43  ;;  %v1178_v18 = vmul.f32 %v2170_v17, %v1952_v43 }
 0x2fc   : > { %v1174_v42 = vadd.f32 %v1173_v41, %v961_v40 }
 0x2fe   : > { %1953 = vtanh.f32 %v1174_v42 }
 0x308   : > { %v1954_v45 = vpop.eup %1953  ;;  %719 = sbr.rel (!%p716_p8) target bundleno = 455 (0x1c7), region = 137 }
 0x309   : > { %v1177_v31 = vmul.f32 %v1954_v45, %v1176_v44 }
 0x30b   : > { %v1179_v47 = vadd.f32 %v1178_v18, %v1177_v31  ;;  %v2690_v18 = vmov %v953_v30 }
 0x30d   : > { %v1187_v48 = vsel %vm1186_vm4, %v1179_v47, %v2170_v17  }
 0x30e   : > { %v2689_v17 = vmov %v1187_v48  ;;  %v2691_v15 = vmov (%p716_p8), %v1187_v48 }
 0x30f PF:  { %v1204_v49 = vld [vmem:[#allocation13 + $0x80] sm:$0xff]  ;;  %v1205_v1 = vld [vmem:[#allocation13 + $0x88] sm:$0xff]  ;;  %1291 = vmatprep.mubr.f32.mxu0 %v2186_v16  ;;  %v1206_v37 = vld [vmem:[#allocation13 + $0x90] sm:$0xff]  ;;  %s2205_s15 = smov [#allocation15]   ;;  %v2186_v16 = vphi %v2575_v16, %v2692_v16   ;;  %v2182_v15 = vphi %v2573_v15, %v2691_v15  }
 0x310   :  { %v1188_v50 = vld [vmem:[#allocation13] sm:$0xff]  ;;  %v1817_v51 = vpack.c.bf16 %v1205_v1, %v1204_v49  ;;  %v1189_v52 = vld [vmem:[#allocation13 + $0x8] sm:$0xff]  ;;  %v1207_v53 = vld [vmem:[#allocation13 + $0x98] sm:$0xff]  ;;  %s1304_s20 = sshll.u32 %s2205_s15, 4  ;;  %s1305_s20 = int_to_ptr.vmem [resolvable:$true] %s1304_s20 }
 0x311   :  { %v1819_v38 = vpack.c.bf16 %v1189_v52, %v1188_v50  ;;  %v1821_v0 = vpack.c.bf16 %v1207_v53, %v1206_v37  ;;  %v1190_v17 = vld [vmem:[#allocation13 + $0x10] sm:$0xff]  ;;  %v1191_v33 = vld [vmem:[#allocation13 + $0x18] sm:$0xff]  ;;  %v1208_v39 = vld [vmem:[#allocation13 + $0xa0] sm:$0xff]  ;;  %s2106_s9 = scalar_lea.vmem %s1305_s20, 128  ;;  %p2111_p11 = scmp.lt.s32.totalorder %s1305_s20, %s1305_s20 }
 0x312   :  { %1818 = vmatprep.subr.bf16.mxu0 %v1817_v51  ;;  %v1209_v54 = vld [vmem:[#allocation13 + $0xa8] sm:$0xff]  ;;  %v1823_v55 = vpack.c.bf16 %v1191_v33, %v1190_v17  ;;  %v1192_v57 = vld [vmem:[#allocation13 + $0x20] sm:$0xff]  ;;  %v1210_v59 = vld [vmem:[#allocation13 + $0xb0] sm:$0xff]  ;;  %p2107_p10 = scmp.ne.s32.totalorder %s1305_s20, %s2106_s9  ;;  %p2112_p12 = scmp.lt.s32.totalorder %s2106_s9, %s2106_s9 }
 0x313   :  { %1820 = vmatpush3.bf16.msra.mxu0 %v1819_v38  ;;  %v1825_v56 = vpack.c.bf16 %v1209_v54, %v1208_v39  ;;  %v1193_v58 = vld [vmem:[#allocation13 + $0x28] sm:$0xff]  ;;  %v1211_v60 = vld [vmem:[#allocation13 + $0xb8] sm:$0xff]  ;;  %v1194_v62 = vld [vmem:[#allocation13 + $0x30] sm:$0xff] }
 0x314   :  { %1822 = vmatprep.subr.bf16.mxu0 %v1821_v0  ;;  %v1827_v26 = vpack.c.bf16 %v1193_v58, %v1192_v57  ;;  %v1829_v61 = vpack.c.bf16 %v1211_v60, %v1210_v59  ;;  %v1195_v63 = vld [vmem:[#allocation13 + $0x38] sm:$0xff]  ;;  %v1212_v2 = vld [vmem:[#allocation13 + $0xc0] sm:$0xff]  ;;  %v1213_v3 = vld [vmem:[#allocation13 + $0xc8] sm:$0xff]  ;;  %p2113_p13 = por %p2112_p12, %p2111_p11 }
 0x315   :  { %v1831_v4 = vpack.c.bf16 %v1195_v63, %v1194_v62  ;;  %v1833_v5 = vpack.c.bf16 %v1213_v3, %v1212_v2  ;;  %v1196_v6 = vld [vmem:[#allocation13 + $0x40] sm:$0xff]  ;;  %v1197_v7 = vld [vmem:[#allocation13 + $0x48] sm:$0xff]  ;;  %v1214_v8 = vld [vmem:[#allocation13 + $0xd0] sm:$0xff] }
 0x316   :  { %v1215_v9 = vld [vmem:[#allocation13 + $0xd8] sm:$0xff]  ;;  %v1835_v10 = vpack.c.bf16 %v1197_v7, %v1196_v6  ;;  %v1198_v12 = vld [vmem:[#allocation13 + $0x50] sm:$0xff]  ;;  %v1216_v14 = vld [vmem:[#allocation13 + $0xe0] sm:$0xff]  ;;  %p2114_p0 = pnand %p2113_p13, %p2107_p10 }
 0x317   :  { %1824 = vmatpush3.bf16.msra.mxu0 %v1823_v55  ;;  %v1837_v11 = vpack.c.bf16 %v1215_v9, %v1214_v8  ;;  %v1199_v13 = vld [vmem:[#allocation13 + $0x58] sm:$0xff]  ;;  %v1217_v16 = vld [vmem:[#allocation13 + $0xe8] sm:$0xff]  ;;  %v1200_v21 = vld [vmem:[#allocation13 + $0x60] sm:$0xff] }
 0x318   :  { %1826 = vmatprep.subr.bf16.mxu0 %v1825_v56  ;;  %v1839_v19 = vpack.c.bf16 %v1199_v13, %v1198_v12  ;;  %v1841_v20 = vpack.c.bf16 %v1217_v16, %v1216_v14  ;;  %v1201_v22 = vld [vmem:[#allocation13 + $0x68] sm:$0xff]  ;;  %v1218_v23 = vld [vmem:[#allocation13 + $0xf0] sm:$0xff]  ;;  %v1219_v24 = vld [vmem:[#allocation13 + $0xf8] sm:$0xff] }
 0x319   :  { %v1843_v25 = vpack.c.bf16 %v1201_v22, %v1200_v21  ;;  %v1845_v28 = vpack.c.bf16 %v1219_v24, %v1218_v23  ;;  %v1202_v29 = vld [vmem:[#allocation13 + $0x70] sm:$0xff]  ;;  %v1203_v30 = vld [vmem:[#allocation13 + $0x78] sm:$0xff]  ;;  %v1464_v35 = vld [vmem:[%s2685_s10] ss:$0 sm:$0xff] }
 0x31a   :  { %v1847_v27 = vpack.c.bf16 %v1203_v30, %v1202_v29 }
 0x31b   :  { %1828 = vmatpush3.bf16.msra.mxu0 %v1827_v26 }
 0x31c   :  { %1830 = vmatprep.subr.bf16.mxu0 %v1829_v61 }
 0x31f   :  { %1832 = vmatpush3.bf16.msra.mxu0 %v1831_v4 }
 0x320   :  { %1834 = vmatprep.subr.bf16.mxu0 %v1833_v5 }
 0x323   :  { %1836 = vmatpush3.bf16.msra.mxu0 %v1835_v10 }
 0x324   :  { %1838 = vmatprep.subr.bf16.mxu0 %v1837_v11 }
 0x327   :  { %1840 = vmatpush3.bf16.msra.mxu0 %v1839_v19 }
 0x328   :  { %1842 = vmatprep.subr.bf16.mxu0 %v1841_v20 }
 0x32b   :  { %1844 = vmatpush3.bf16.msra.mxu0 %v1843_v25 }
 0x32c   :  { %1846 = vmatprep.subr.bf16.mxu0 %v1845_v28 }
 0x32f   :  { %1848 = vmatpush3.bf16.msra.mxu0 %v1847_v27 }
 0x332   :  { %1292 = vmatmul.mubr.f32.vlgmr.msra.gmra.mrb[0].mxu0 %v2182_v15 }
 0x405   :  { %v1536_v32 = vpop.f32.mrb[0].mxu0 }
 0x406   :  { %v1537_v34 = vpop.f32.mrb[1].mxu0 }
 0x407   :  { %v1538_v36 = vadd.f32 %v1537_v34, %v1536_v32 }
 0x409   :  { %v1294_v40 = vadd.f32 %v1538_v36, %v1464_v35 }
 0x40b   :  { %1297 = vst [vmem:[#allocation15] sm:$0xff] %v1294_v40 }
 0x40c   :  { %2117 = shalt.err (!%p2114_p0)
}
 0x40d   :  { %s2118_s3 = scalar_lea.hbm %s2686_s11, 128 }
 0x40e   :  { %p2119_p1 = scmp.ne.s32.totalorder %s2686_s11, %s2118_s3  ;;  %p2122_p2 = scmp.lt.u32.totalorder %s2118_s3, %s2686_s11 }
 0x410   :  { %p2124_p3 = pnand %p2122_p2, %p2119_p1 }
 0x412   :  { %2127 = shalt.err (!%p2124_p3)
}
 0x413   :  { %1307 = dma.vmem_to_hbm [thread:$0]  %s1305_s20, 128, %s2686_s11, [#allocation7]  }
 0x414   :  { %2162 = dma.done.wait [#allocation7], 128  }
 0x415   :  { %2163 = vsyncadd [#allocation7], 4294967168 }
 0x416   :  { %1311 = vsyncpa [#allocation6], 1 }
 0x417   :  { %1312 = vsyncpa [#allocation11], 1 }
 0x418   :  { %1313 = vsyncpa [#allocation14], 1 }
 0x419   :  { %1314 = vsyncpa [#allocation7], 1 }
 0x41a   :  { %1315 = vsyncpa [#allocation8], 1 }
 0x41b   :  { %1316 = vsyncmov [#allocation4] }
 0x41e   :  { %s1317_s26 = vpop.sfrf %1316 }
 0x41f   :  { %p1465_p6 = scmp.ne.s32.totalorder %s1317_s26, 0 }
 0x421   :  { %1321 = shalt.err (%p1465_p6)  }
 0x422   :  { %1323 = vsyncmov [#allocation4 + $0x1] }
 0x425   :  { %s1324_s28 = vpop.sfrf %1323 }
 0x426   :  { %p1466_p7 = scmp.ne.s32.totalorder %s1324_s28, 0 }
 0x428   :  { %1328 = shalt.err (%p1466_p7)  }

</bundles_post_ra>
